<compile_context>
chip_gen: v7x
topology: tpu7x:2x2x1
jax: 0.10.0
libtpu: 0.0.40
codegen_flags: <defaults>
</compile_context>

<pallas_src>
import jax
import jax.numpy as jnp
from jax.experimental import pallas as pl
from jax.experimental.pallas import tpu as pltpu

# ----------------------------- configuration ------------------------------
IMG_SIZE = (1, 16, 16)                      # (n_chan, height, width)
D_IMG = IMG_SIZE[0] * IMG_SIZE[1] * IMG_SIZE[2]   # 256 (2 clean K-tiles of 128)
LATENT_Z = 8                                # latent_dim
LATENT_W = 6                                # latent_dim_prop
COND_DIM = 4                                # latent_dim_cond
NUM_PROP = 3                                # num_prop
HID = 32                                    # hid_channels
BATCH = 256
TB = 128                                    # batch tile (full sublane / MXU rows)

HEAD_W = 2 * LATENT_Z + 2 * LATENT_W        # 28  : [zm | wm | zl | wl]
AUX_W = COND_DIM + LATENT_Z + LATENT_W      # 18  : [cond | eps_z | eps_w]
DEC_IN = LATENT_Z + LATENT_W + COND_DIM     # 18  : [z | w | cond]
PACK_W = HEAD_W + LATENT_Z + LATENT_W + NUM_PROP   # 45
SMALL_W = 128                               # lane-dense packed output width


# ------------------------------ Pallas kernel -----------------------------
def controlvae_kernel(
    # batched data
    x_ref,        # (TB, D_IMG)       flattened image
    aux_ref,      # (TB, AUX_W)       [cond | eps_z | eps_w]
    # encoder params
    ew1x_ref,     # (D_IMG, HID)      bf16
    ew1c_ref,     # (COND_DIM, HID)   bf16
    eb1_ref,      # (1, HID)          f32
    ehw_ref,      # (HID, HEAD_W)     bf16  fused heads [zm|wm|zl|wl]
    ehb_ref,      # (1, HEAD_W)       f32
    # decoder params
    dw1_ref,      # (DEC_IN, HID)     bf16  stacked [z; w; cond]
    db1_ref,      # (1, HID)          f32
    dw2_ref,      # (HID, D_IMG)      bf16
    db2_ref,      # (1, D_IMG)        f32
    pw_ref,       # (LATENT_W, NUM_PROP) f32  (mask * prop_w, pre-multiplied)
    pb_ref,       # (1, NUM_PROP)     f32
    # outputs
    small_ref,    # (TB, SMALL_W)     packed [zm|wm|zl|wl|z|w|y|0...]
    recon_ref,    # (TB, D_IMG)
):
    f32 = jnp.float32
    bf16 = jnp.bfloat16

    aux = aux_ref[...]
    cond = aux[:, 0:COND_DIM]
    eps_z = aux[:, COND_DIM:COND_DIM + LATENT_Z]
    eps_w = aux[:, COND_DIM + LATENT_Z:AUX_W]

    # ---- encoder: shared hidden layer (split K: 256 image + 4 cond) --------
    h = jnp.dot(x_ref[...].astype(bf16), ew1x_ref[...],
                preferred_element_type=f32)
    h = h + jnp.dot(cond.astype(bf16), ew1c_ref[...],
                    preferred_element_type=f32)
    h = jnp.maximum(h + eb1_ref[...], 0.0)

    # ---- fused heads: one matmul for [z_mean | w_mean | z_logvar | w_logvar]
    heads = (jnp.dot(h.astype(bf16), ehw_ref[...], preferred_element_type=f32)
             + ehb_ref[...])
    zm = heads[:, 0:LATENT_Z]
    wm = heads[:, LATENT_Z:LATENT_Z + LATENT_W]
    zl = heads[:, LATENT_Z + LATENT_W:2 * LATENT_Z + LATENT_W]
    wl = heads[:, 2 * LATENT_Z + LATENT_W:HEAD_W]

    # ---- reparameterization: mean + exp(0.5*logvar) * eps (f32 elementwise) -
    z = zm + jnp.exp(0.5 * zl) * eps_z
    w = wm + jnp.exp(0.5 * wl) * eps_w

    # ---- decoder: single K=18 matmul on concat([z, w, cond]) ---------------
    zwc = jnp.concatenate([z, w, cond], axis=1)
    hd = jnp.maximum(
        jnp.dot(zwc.astype(bf16), dw1_ref[...], preferred_element_type=f32)
        + db1_ref[...], 0.0)
    recon_logits = (jnp.dot(hd.astype(bf16), dw2_ref[...],
                            preferred_element_type=f32) + db2_ref[...])
    recon_ref[...] = jax.nn.sigmoid(recon_logits)

    # ---- per-property prediction from masked w ------------------------------
    # y[b, p] = sum_l w[b, l] * (mask[p, l] * prop_w[p, l]) + prop_b[p]
    y = jnp.dot(w, pw_ref[...], preferred_element_type=f32) + pb_ref[...]

    # ---- single lane-dense packed output ------------------------------------
    pad = jnp.zeros((heads.shape[0], SMALL_W - PACK_W), f32)
    small_ref[...] = jnp.concatenate([heads, z, w, y, pad], axis=1)


# ----------------------------- python wrapper ------------------------------
def controlvae_forward(params, x, cond, tau, key):
    B = x.shape[0]
    C, H, W = IMG_SIZE
    assert B % TB == 0, "batch must be a multiple of the batch tile"
    nb = B // TB

    x_flat = x.reshape(B, D_IMG)                       # matches torch .view

    k_ez, k_ew, k_g = jax.random.split(key, 3)
    eps_z = jax.random.normal(k_ez, (B, LATENT_Z), jnp.float32)
    eps_w = jax.random.normal(k_ew, (B, LATENT_W), jnp.float32)
    aux = jnp.concatenate([cond, eps_z, eps_w], axis=1)        # (B, 18)

    # mask = gumbel_softmax(sigmoid(w_mask)/(1-sigmoid(w_mask)), tau, hard)[:, :, 1]
    wmask = params["w_mask"]
    sig = jax.nn.sigmoid(wmask)
    logit = sig / (1.0 - sig)
    g = jax.random.gumbel(k_g, logit.shape, jnp.float32)
    y_soft = jax.nn.softmax((logit + g) / tau, axis=-1)
    hard = jax.nn.one_hot(jnp.argmax(y_soft, axis=-1), 2, dtype=jnp.float32)
    mask = hard[:, :, 1]                               # (NUM_PROP, LATENT_W)
    pw_eff = mask.T * params["prop_w_t"]               # (LATENT_W, NUM_PROP)

    def batched(d):
        return pl.BlockSpec((TB, d), lambda i: (i, 0))

    def resident(shape):
        return pl.BlockSpec(shape, lambda i: (0, 0))

    inputs = (
        x_flat, aux,
        params["enc_w1x"], params["enc_w1c"], params["enc_b1"],
        params["enc_whead"], params["enc_bhead"],
        params["dec_w1"], params["dec_b1"], params["dec_w2"], params["dec_b2"],
        pw_eff, params["prop_b"],
    )
    in_specs = [
        batched(D_IMG), batched(AUX_W),
        resident((D_IMG, HID)), resident((COND_DIM, HID)), resident((1, HID)),
        resident((HID, HEAD_W)), resident((1, HEAD_W)),
        resident((DEC_IN, HID)), resident((1, HID)),
        resident((HID, D_IMG)), resident((1, D_IMG)),
        resident((LATENT_W, NUM_PROP)), resident((1, NUM_PROP)),
    ]
    out_shapes = (
        jax.ShapeDtypeStruct((B, SMALL_W), jnp.float32),   # packed small outputs
        jax.ShapeDtypeStruct((B, D_IMG), jnp.float32),     # reconstruct (flat)
    )
    out_specs = (batched(SMALL_W), batched(D_IMG))

    small, recon_flat = pl.pallas_call(
        controlvae_kernel,
        out_shape=out_shapes,
        grid=(nb,),
        in_specs=in_specs,
        out_specs=out_specs,
        compiler_params=pltpu.CompilerParams(
            dimension_semantics=("parallel",),
            vmem_limit_bytes=32 * 1024 * 1024,
        ),
    )(*inputs)

    # unpack the lane-dense slab
    zm = small[:, 0:LATENT_Z]
    wm = small[:, LATENT_Z:LATENT_Z + LATENT_W]
    zl = small[:, LATENT_Z + LATENT_W:2 * LATENT_Z + LATENT_W]
    wl = small[:, 2 * LATENT_Z + LATENT_W:HEAD_W]
    z = small[:, HEAD_W:HEAD_W + LATENT_Z]
    w = small[:, HEAD_W + LATENT_Z:HEAD_W + LATENT_Z + LATENT_W]
    y = small[:, HEAD_W + LATENT_Z + LATENT_W:PACK_W]
    recon = recon_flat.reshape(B, C, H, W)

    # Same return structure as the PyTorch forward():
    return ((recon, y), (zm, zl), (wm, wl), z, w, mask, cond, wmask)


# ------------------------- deterministic parameters ------------------------
def init_params(key):
    ks = jax.random.split(key, 7)
    s = 0.05

    def nrm(k, shape, dtype=jnp.bfloat16):
        return (s * jax.random.normal(k, shape, jnp.float32)).astype(dtype)

    return dict(
        # encoder (first layer split over image / cond; heads fused)
        enc_w1x=nrm(ks[0], (D_IMG, HID)),
        enc_w1c=nrm(ks[1], (COND_DIM, HID)),
        enc_b1=jnp.zeros((1, HID), jnp.float32),
        enc_whead=nrm(ks[2], (HID, HEAD_W)),        # [zm | wm | zl | wl]
        enc_bhead=jnp.zeros((1, HEAD_W), jnp.float32),
        # decoder (first-layer weights stacked [z; w; cond])
        dec_w1=nrm(ks[3], (DEC_IN, HID)),
        dec_b1=jnp.zeros((1, HID), jnp.float32),
        dec_w2=nrm(ks[4], (HID, D_IMG)),
        dec_b2=jnp.zeros((1, D_IMG), jnp.float32),
        # per-property heads (stored transposed: (LATENT_W, NUM_PROP))
        prop_w_t=nrm(ks[5], (LATENT_W, NUM_PROP), jnp.float32),
        prop_b=jnp.zeros((1, NUM_PROP), jnp.float32),
        # self.w_mask = nn.Parameter(torch.randn(num_prop, latent_dim_w, 2))
        w_mask=jax.random.normal(ks[6], (NUM_PROP, LATENT_W, 2), jnp.float32),
    )


# ----------------------------------- main -----------------------------------
if __name__ == "__main__":
    root = jax.random.PRNGKey(0)
    kp, kx, kc, kn = jax.random.split(root, 4)

    params = init_params(kp)
    x = jax.random.normal(kx, (BATCH,) + IMG_SIZE, jnp.float32)   # (256, 1, 16, 16)
    cond = jax.random.normal(kc, (BATCH, COND_DIM), jnp.float32)  # (256, 4)
    tau = 0.67

    out = controlvae_forward(params, x, cond, tau, kn)
    jax.block_until_ready(out)

    (recon, y), (zm, zl), (wm, wl), z, w, mask, cond_out, w_mask = out
    assert recon.shape == (BATCH,) + IMG_SIZE
    assert y.shape == (BATCH, NUM_PROP)
    assert zm.shape == (BATCH, LATENT_Z) and zl.shape == (BATCH, LATENT_Z)
    assert wm.shape == (BATCH, LATENT_W) and wl.shape == (BATCH, LATENT_W)
    assert z.shape == (BATCH, LATENT_Z) and w.shape == (BATCH, LATENT_W)
    assert mask.shape == (NUM_PROP, LATENT_W)
    assert w_mask.shape == (NUM_PROP, LATENT_W, 2)
    print("KERNEL_OK")
</pallas_src>

<mosaic_0001>
module attributes {stable_mosaic.version = 11 : i64} {
  func.func @controlvae_kernel(%arg0: i32, %arg1: memref<128x256xf32, #tpu.memory_space<vmem>>, %arg2: memref<128x18xf32, #tpu.memory_space<vmem>>, %arg3: memref<256x32xbf16, #tpu.memory_space<vmem>>, %arg4: memref<4x32xbf16, #tpu.memory_space<vmem>>, %arg5: memref<1x32xf32, #tpu.memory_space<vmem>>, %arg6: memref<32x28xbf16, #tpu.memory_space<vmem>>, %arg7: memref<1x28xf32, #tpu.memory_space<vmem>>, %arg8: memref<18x32xbf16, #tpu.memory_space<vmem>>, %arg9: memref<1x32xf32, #tpu.memory_space<vmem>>, %arg10: memref<32x256xbf16, #tpu.memory_space<vmem>>, %arg11: memref<1x256xf32, #tpu.memory_space<vmem>>, %arg12: memref<6x3xf32, #tpu.memory_space<vmem>>, %arg13: memref<1x3xf32, #tpu.memory_space<vmem>>, %arg14: memref<128x128xf32, #tpu.memory_space<vmem>>, %arg15: memref<128x256xf32, #tpu.memory_space<vmem>>) attributes {dimension_semantics = [#tpu.dimension_semantics<parallel>], iteration_bounds = array<i64: 2>, scalar_prefetch = 0 : i64, scratch_operands = 0 : i64, tpu.core_type = #tpu.core_type<tc>, window_params = [{transform_indices = @transform_0, window_bounds = array<i64: 128, 256>}, {transform_indices = @transform_1, window_bounds = array<i64: 128, 18>}, {pipeline_mode = #tpu.pipeline_mode<synchronous>, transform_indices = @transform_2, window_bounds = array<i64: 256, 32>}, {pipeline_mode = #tpu.pipeline_mode<synchronous>, transform_indices = @transform_3, window_bounds = array<i64: 4, 32>}, {pipeline_mode = #tpu.pipeline_mode<synchronous>, transform_indices = @transform_4, window_bounds = array<i64: 1, 32>}, {pipeline_mode = #tpu.pipeline_mode<synchronous>, transform_indices = @transform_5, window_bounds = array<i64: 32, 28>}, {pipeline_mode = #tpu.pipeline_mode<synchronous>, transform_indices = @transform_6, window_bounds = array<i64: 1, 28>}, {pipeline_mode = #tpu.pipeline_mode<synchronous>, transform_indices = @transform_7, window_bounds = array<i64: 18, 32>}, {pipeline_mode = #tpu.pipeline_mode<synchronous>, transform_indices = @transform_8, window_bounds = array<i64: 1, 32>}, {pipeline_mode = #tpu.pipeline_mode<synchronous>, transform_indices = @transform_9, window_bounds = array<i64: 32, 256>}, {pipeline_mode = #tpu.pipeline_mode<synchronous>, transform_indices = @transform_10, window_bounds = array<i64: 1, 256>}, {pipeline_mode = #tpu.pipeline_mode<synchronous>, transform_indices = @transform_11, window_bounds = array<i64: 6, 3>}, {pipeline_mode = #tpu.pipeline_mode<synchronous>, transform_indices = @transform_12, window_bounds = array<i64: 1, 3>}, {transform_indices = @transform_13, window_bounds = array<i64: 128, 128>}, {transform_indices = @transform_14, window_bounds = array<i64: 128, 256>}]} {
    %c0 = arith.constant 0 : index
    %c0_0 = arith.constant 0 : index
    %0 = vector.load %arg2[%c0, %c0_0] : memref<128x18xf32, #tpu.memory_space<vmem>>, vector<128x18xf32>
    %1 = vector.extract_strided_slice %0 {offsets = [0, 0], sizes = [128, 4], strides = [1, 1]} : vector<128x18xf32> to vector<128x4xf32>
    %2 = vector.extract_strided_slice %0 {offsets = [0, 4], sizes = [128, 8], strides = [1, 1]} : vector<128x18xf32> to vector<128x8xf32>
    %3 = vector.extract_strided_slice %0 {offsets = [0, 12], sizes = [128, 6], strides = [1, 1]} : vector<128x18xf32> to vector<128x6xf32>
    %c0_1 = arith.constant 0 : index
    %c0_2 = arith.constant 0 : index
    %4 = vector.load %arg1[%c0_1, %c0_2] : memref<128x256xf32, #tpu.memory_space<vmem>>, vector<128x256xf32>
    %5 = arith.truncf %4 : vector<128x256xf32> to vector<128x256xbf16>
    %c0_3 = arith.constant 0 : index
    %c0_4 = arith.constant 0 : index
    %6 = vector.load %arg3[%c0_3, %c0_4] : memref<256x32xbf16, #tpu.memory_space<vmem>>, vector<256x32xbf16>
    %cst = arith.constant dense<0.000000e+00> : vector<128x32xf32>
    %7 = tpu.matmul %5, %6, %cst {dimension_numbers = #tpu.dot_dimension_numbers<[1], [0], [0], [1], [0, 0, 1, 1], [], []>} : vector<128x256xbf16>, vector<256x32xbf16>, vector<128x32xf32> -> vector<128x32xf32>
    %8 = arith.truncf %1 : vector<128x4xf32> to vector<128x4xbf16>
    %c0_5 = arith.constant 0 : index
    %c0_6 = arith.constant 0 : index
    %9 = vector.load %arg4[%c0_5, %c0_6] : memref<4x32xbf16, #tpu.memory_space<vmem>>, vector<4x32xbf16>
    %cst_7 = arith.constant dense<0.000000e+00> : vector<128x32xf32>
    %10 = tpu.matmul %8, %9, %cst_7 {dimension_numbers = #tpu.dot_dimension_numbers<[1], [0], [0], [1], [0, 0, 1, 1], [], []>} : vector<128x4xbf16>, vector<4x32xbf16>, vector<128x32xf32> -> vector<128x32xf32>
    %11 = arith.addf %7, %10 : vector<128x32xf32>
    %c0_8 = arith.constant 0 : index
    %c0_9 = arith.constant 0 : index
    %12 = vector.load %arg5[%c0_8, %c0_9] : memref<1x32xf32, #tpu.memory_space<vmem>>, vector<1x32xf32>
    %13 = vector.broadcast %12 : vector<1x32xf32> to vector<128x32xf32>
    %14 = arith.addf %11, %13 : vector<128x32xf32>
    %cst_10 = arith.constant 0.000000e+00 : f32
    %15 = vector.broadcast %cst_10 : f32 to vector<128x32xf32>
    %16 = arith.maximumf %14, %15 : vector<128x32xf32>
    %17 = arith.truncf %16 : vector<128x32xf32> to vector<128x32xbf16>
    %c0_11 = arith.constant 0 : index
    %c0_12 = arith.constant 0 : index
    %18 = vector.load %arg6[%c0_11, %c0_12] : memref<32x28xbf16, #tpu.memory_space<vmem>>, vector<32x28xbf16>
    %cst_13 = arith.constant dense<0.000000e+00> : vector<128x28xf32>
    %19 = tpu.matmul %17, %18, %cst_13 {dimension_numbers = #tpu.dot_dimension_numbers<[1], [0], [0], [1], [0, 0, 1, 1], [], []>} : vector<128x32xbf16>, vector<32x28xbf16>, vector<128x28xf32> -> vector<128x28xf32>
    %c0_14 = arith.constant 0 : index
    %c0_15 = arith.constant 0 : index
    %20 = vector.load %arg7[%c0_14, %c0_15] : memref<1x28xf32, #tpu.memory_space<vmem>>, vector<1x28xf32>
    %21 = vector.broadcast %20 : vector<1x28xf32> to vector<128x28xf32>
    %22 = arith.addf %19, %21 : vector<128x28xf32>
    %23 = vector.extract_strided_slice %22 {offsets = [0, 0], sizes = [128, 8], strides = [1, 1]} : vector<128x28xf32> to vector<128x8xf32>
    %24 = vector.extract_strided_slice %22 {offsets = [0, 8], sizes = [128, 6], strides = [1, 1]} : vector<128x28xf32> to vector<128x6xf32>
    %25 = vector.extract_strided_slice %22 {offsets = [0, 14], sizes = [128, 8], strides = [1, 1]} : vector<128x28xf32> to vector<128x8xf32>
    %26 = vector.extract_strided_slice %22 {offsets = [0, 22], sizes = [128, 6], strides = [1, 1]} : vector<128x28xf32> to vector<128x6xf32>
    %cst_16 = arith.constant 5.000000e-01 : f32
    %27 = vector.broadcast %cst_16 : f32 to vector<128x8xf32>
    %28 = arith.mulf %27, %25 : vector<128x8xf32>
    %29 = math.exp %28 : vector<128x8xf32>
    %30 = arith.mulf %29, %2 : vector<128x8xf32>
    %31 = arith.addf %23, %30 : vector<128x8xf32>
    %cst_17 = arith.constant 5.000000e-01 : f32
    %32 = vector.broadcast %cst_17 : f32 to vector<128x6xf32>
    %33 = arith.mulf %32, %26 : vector<128x6xf32>
    %34 = math.exp %33 : vector<128x6xf32>
    %35 = arith.mulf %34, %3 : vector<128x6xf32>
    %36 = arith.addf %24, %35 : vector<128x6xf32>
    %37 = tpu.concatenate %31, %36, %1 in 1 : vector<128x8xf32>, vector<128x6xf32>, vector<128x4xf32> -> vector<128x18xf32>
    %38 = arith.truncf %37 : vector<128x18xf32> to vector<128x18xbf16>
    %c0_18 = arith.constant 0 : index
    %c0_19 = arith.constant 0 : index
    %39 = vector.load %arg8[%c0_18, %c0_19] : memref<18x32xbf16, #tpu.memory_space<vmem>>, vector<18x32xbf16>
    %cst_20 = arith.constant dense<0.000000e+00> : vector<128x32xf32>
    %40 = tpu.matmul %38, %39, %cst_20 {dimension_numbers = #tpu.dot_dimension_numbers<[1], [0], [0], [1], [0, 0, 1, 1], [], []>} : vector<128x18xbf16>, vector<18x32xbf16>, vector<128x32xf32> -> vector<128x32xf32>
    %c0_21 = arith.constant 0 : index
    %c0_22 = arith.constant 0 : index
    %41 = vector.load %arg9[%c0_21, %c0_22] : memref<1x32xf32, #tpu.memory_space<vmem>>, vector<1x32xf32>
    %42 = vector.broadcast %41 : vector<1x32xf32> to vector<128x32xf32>
    %43 = arith.addf %40, %42 : vector<128x32xf32>
    %cst_23 = arith.constant 0.000000e+00 : f32
    %44 = vector.broadcast %cst_23 : f32 to vector<128x32xf32>
    %45 = arith.maximumf %43, %44 : vector<128x32xf32>
    %46 = arith.truncf %45 : vector<128x32xf32> to vector<128x32xbf16>
    %c0_24 = arith.constant 0 : index
    %c0_25 = arith.constant 0 : index
    %47 = vector.load %arg10[%c0_24, %c0_25] : memref<32x256xbf16, #tpu.memory_space<vmem>>, vector<32x256xbf16>
    %cst_26 = arith.constant dense<0.000000e+00> : vector<128x256xf32>
    %48 = tpu.matmul %46, %47, %cst_26 {dimension_numbers = #tpu.dot_dimension_numbers<[1], [0], [0], [1], [0, 0, 1, 1], [], []>} : vector<128x32xbf16>, vector<32x256xbf16>, vector<128x256xf32> -> vector<128x256xf32>
    %c0_27 = arith.constant 0 : index
    %c0_28 = arith.constant 0 : index
    %49 = vector.load %arg11[%c0_27, %c0_28] : memref<1x256xf32, #tpu.memory_space<vmem>>, vector<1x256xf32>
    %50 = vector.broadcast %49 : vector<1x256xf32> to vector<128x256xf32>
    %51 = arith.addf %48, %50 : vector<128x256xf32>
    %52 = arith.negf %51 : vector<128x256xf32>
    %53 = math.exp %52 : vector<128x256xf32>
    %cst_29 = arith.constant 1.000000e+00 : f32
    %54 = vector.broadcast %cst_29 : f32 to vector<128x256xf32>
    %55 = arith.addf %54, %53 : vector<128x256xf32>
    %56 = arith.divf %54, %55 : vector<128x256xf32>
    %c0_30 = arith.constant 0 : index
    %c0_31 = arith.constant 0 : index
    %57 = vector.load %arg15[%c0_30, %c0_31] : memref<128x256xf32, #tpu.memory_space<vmem>>, vector<128x256xf32>
    tpu.vector_store %arg15[%c0_30, %c0_31], %56 {strides = array<i32>} : memref<128x256xf32, #tpu.memory_space<vmem>>, vector<128x256xf32>,
    %c0_32 = arith.constant 0 : index
    %c0_33 = arith.constant 0 : index
    %58 = vector.load %arg12[%c0_32, %c0_33] : memref<6x3xf32, #tpu.memory_space<vmem>>, vector<6x3xf32>
    %cst_34 = arith.constant dense<0.000000e+00> : vector<128x3xf32>
    %59 = tpu.matmul %36, %58, %cst_34 {dimension_numbers = #tpu.dot_dimension_numbers<[1], [0], [0], [1], [0, 0, 1, 1], [], []>} : vector<128x6xf32>, vector<6x3xf32>, vector<128x3xf32> -> vector<128x3xf32>
    %c0_35 = arith.constant 0 : index
    %c0_36 = arith.constant 0 : index
    %60 = vector.load %arg13[%c0_35, %c0_36] : memref<1x3xf32, #tpu.memory_space<vmem>>, vector<1x3xf32>
    %61 = vector.broadcast %60 : vector<1x3xf32> to vector<128x3xf32>
    %62 = arith.addf %59, %61 : vector<128x3xf32>
    %cst_37 = arith.constant 0.000000e+00 : f32
    %63 = vector.broadcast %cst_37 : f32 to vector<128x83xf32>
    %64 = tpu.concatenate %22, %31, %36, %62, %63 in 1 : vector<128x28xf32>, vector<128x8xf32>, vector<128x6xf32>, vector<128x3xf32>, vector<128x83xf32> -> vector<128x128xf32>
    %c0_38 = arith.constant 0 : index
    %c0_39 = arith.constant 0 : index
    %65 = vector.load %arg14[%c0_38, %c0_39] : memref<128x128xf32, #tpu.memory_space<vmem>>, vector<128x128xf32>
    tpu.vector_store %arg14[%c0_38, %c0_39], %64 {strides = array<i32>} : memref<128x128xf32, #tpu.memory_space<vmem>>, vector<128x128xf32>,
    return
  }
  func.func @transform_0(%arg0: i32) -> (i32, i32) {
    %c0_i32 = arith.constant 0 : i32
    %c0_i32_0 = arith.constant 0 : i32
    return %arg0, %c0_i32 : i32, i32
  }
  func.func @transform_1(%arg0: i32) -> (i32, i32) {
    %c0_i32 = arith.constant 0 : i32
    %c0_i32_0 = arith.constant 0 : i32
    return %arg0, %c0_i32 : i32, i32
  }
  func.func @transform_2(%arg0: i32) -> (i32, i32) {
    %c0_i32 = arith.constant 0 : i32
    %c0_i32_0 = arith.constant 0 : i32
    %c0_i32_1 = arith.constant 0 : i32
    return %c0_i32, %c0_i32_0 : i32, i32
  }
  func.func @transform_3(%arg0: i32) -> (i32, i32) {
    %c0_i32 = arith.constant 0 : i32
    %c0_i32_0 = arith.constant 0 : i32
    %c0_i32_1 = arith.constant 0 : i32
    return %c0_i32, %c0_i32_0 : i32, i32
  }
  func.func @transform_4(%arg0: i32) -> (i32, i32) {
    %c0_i32 = arith.constant 0 : i32
    %c0_i32_0 = arith.constant 0 : i32
    %c0_i32_1 = arith.constant 0 : i32
    return %c0_i32, %c0_i32_0 : i32, i32
  }
  func.func @transform_5(%arg0: i32) -> (i32, i32) {
    %c0_i32 = arith.constant 0 : i32
    %c0_i32_0 = arith.constant 0 : i32
    %c0_i32_1 = arith.constant 0 : i32
    return %c0_i32, %c0_i32_0 : i32, i32
  }
  func.func @transform_6(%arg0: i32) -> (i32, i32) {
    %c0_i32 = arith.constant 0 : i32
    %c0_i32_0 = arith.constant 0 : i32
    %c0_i32_1 = arith.constant 0 : i32
    return %c0_i32, %c0_i32_0 : i32, i32
  }
  func.func @transform_7(%arg0: i32) -> (i32, i32) {
    %c0_i32 = arith.constant 0 : i32
    %c0_i32_0 = arith.constant 0 : i32
    %c0_i32_1 = arith.constant 0 : i32
    return %c0_i32, %c0_i32_0 : i32, i32
  }
  func.func @transform_8(%arg0: i32) -> (i32, i32) {
    %c0_i32 = arith.constant 0 : i32
    %c0_i32_0 = arith.constant 0 : i32
    %c0_i32_1 = arith.constant 0 : i32
    return %c0_i32, %c0_i32_0 : i32, i32
  }
  func.func @transform_9(%arg0: i32) -> (i32, i32) {
    %c0_i32 = arith.constant 0 : i32
    %c0_i32_0 = arith.constant 0 : i32
    %c0_i32_1 = arith.constant 0 : i32
    return %c0_i32, %c0_i32_0 : i32, i32
  }
  func.func @transform_10(%arg0: i32) -> (i32, i32) {
    %c0_i32 = arith.constant 0 : i32
    %c0_i32_0 = arith.constant 0 : i32
    %c0_i32_1 = arith.constant 0 : i32
    return %c0_i32, %c0_i32_0 : i32, i32
  }
  func.func @transform_11(%arg0: i32) -> (i32, i32) {
    %c0_i32 = arith.constant 0 : i32
    %c0_i32_0 = arith.constant 0 : i32
    %c0_i32_1 = arith.constant 0 : i32
    return %c0_i32, %c0_i32_0 : i32, i32
  }
  func.func @transform_12(%arg0: i32) -> (i32, i32) {
    %c0_i32 = arith.constant 0 : i32
    %c0_i32_0 = arith.constant 0 : i32
    %c0_i32_1 = arith.constant 0 : i32
    return %c0_i32, %c0_i32_0 : i32, i32
  }
  func.func @transform_13(%arg0: i32) -> (i32, i32) {
    %c0_i32 = arith.constant 0 : i32
    %c0_i32_0 = arith.constant 0 : i32
    return %arg0, %c0_i32 : i32, i32
  }
  func.func @transform_14(%arg0: i32) -> (i32, i32) {
    %c0_i32 = arith.constant 0 : i32
    %c0_i32_0 = arith.constant 0 : i32
    return %arg0, %c0_i32 : i32, i32
  }
}

</mosaic_0001>

<bundles_post_ra>
// kernel: tpu_custom_call.1
= control target key start
LH: loop header
LB: loop body
LE: loop exit
PB: predicated region body
PF: predicated region fallthrough
CT: control target
= control target key end

     0   :  { %s4375_s0 = inlined_call_operand.hbm [shape: f32[256,256], index: 0, kind: input, shape index: {}]   ;;  %s4376_s1 = inlined_call_operand.vmem [shape: f32[256,18], index: 1, kind: input, shape index: {}]   ;;  %s4377_s2 = inlined_call_operand.vmem [shape: bf16[256,32], index: 2, kind: input, shape index: {}]   ;;  %s4378_s3 = inlined_call_operand.vmem [shape: bf16[4,32], index: 3, kind: input, shape index: {}]   ;;  %s4379_s4 = inlined_call_operand.vmem [shape: f32[1,32], index: 4, kind: input, shape index: {}]   ;;  %s4380_s5 = inlined_call_operand.vmem [shape: bf16[32,28], index: 5, kind: input, shape index: {}]   ;;  %s4381_s6 = inlined_call_operand.vmem [shape: f32[1,28], index: 6, kind: input, shape index: {}]   ;;  %s4382_s7 = inlined_call_operand.vmem [shape: bf16[18,32], index: 7, kind: input, shape index: {}]   ;;  %s4383_s8 = inlined_call_operand.vmem [shape: f32[1,32], index: 8, kind: input, shape index: {}]   ;;  %s4384_s9 = inlined_call_operand.vmem [shape: bf16[32,256], index: 9, kind: input, shape index: {}]   ;;  %s4385_s10 = inlined_call_operand.vmem [shape: f32[1,256], index: 10, kind: input, shape index: {}]   ;;  %s4386_s11 = inlined_call_operand.vmem [shape: f32[6,3], index: 11, kind: input, shape index: {}]   ;;  %s4387_s12 = inlined_call_operand.vmem [shape: f32[1,3], index: 12, kind: input, shape index: {}]   ;;  %s4388_s13 = inlined_call_operand.hbm [shape: f32[256,128], index: 13, kind: output, shape index: {0}]   ;;  %s4389_s14 = inlined_call_operand.hbm [shape: f32[256,256], index: 14, kind: output, shape index: {1}]  }
   0x1   :  { %4396 = sst [smem:[#allocation15_spill]] %s4375_s0 }
   0x2   :  { %4397 = sst [smem:[#allocation16_spill]] %s4389_s14 }
   0x3   :  { %20 = vsyncpa [#allocation3], 0 }
   0x4   :  { %22 = vsyncpa [#allocation3 + $0x1], 0 }
   0x5   :  { %23 = vsyncpa [#allocation4], 0 }
   0x6   :  { %25 = vsyncpa [#allocation4 + $0x1], 0 }
   0x7   :  { %26 = vsyncpa [#allocation7], 0 }
   0x8   :  { %28 = vsyncpa [#allocation7 + $0x1], 0  ;;  %s3433_s29 = smov 0   ;;  %s3435_s30 = smov 0  }
   0x9   :  { %s3437_s15 = smov 0   ;;  %s3439_s16 = smov 0  }
   0xa LB: > { %4398 = sst [smem:[#allocation11_spill]] %s3328_s29  ;;  %s3454_s17 = sadd.s32 4294967295, %s3340_s16   ;;  %s3340_s16 = sphi %s3439_s16, %s4414_s16   ;;  %s3336_s15 = sphi %s3437_s15, %s4416_s15   ;;  %s3332_s30 = sphi %s3435_s30, %s4418_s30   ;;  %s3328_s29 = sphi %s3433_s29, %s4417_s29  }
   0xb   : > { %4399 = sst [smem:[#allocation12_spill]] %s3336_s15  ;;  %s2574_s18 = sadd.s32 4294967294, %s3340_s16  }
   0xc   : > { %s3458_s19 = sadd.s32 1, %s3340_s16   ;;  %s41_s20 = sadd.s32 1, %s3336_s15 }
   0xd   : > { %4400 = sst [smem:[#allocation13_spill]] %s3458_s19  ;;  %s38_s21 = ssub.s32 %s3340_s16, %s3458_s19 }
   0xe   : > { %p48_p0 = scmp.ne.s32.totalorder %s3336_s15, %s3332_s30  ;;  %p39_p1 = scmp.eq.s32.totalorder %s38_s21, 0 }
   0xf   : > { %p49_p2 = scmp.eq.s32.totalorder %s3340_s16, 0  ;;  %p54_p3 = scmp.ne.s32.totalorder %s3332_s30, %s3328_s29 }
  0x10   : > { %p55_p4 = scmp.eq.s32.totalorder %s3454_s17, 0  ;;  %p335_p7 = scmp.eq.s32.totalorder %s3454_s17, 1 }
  0x11   : > { %s3470_s22 = scalar_select %p39_p1, %s3336_s15, %s41_s20  }
  0x12   : > { %p3472_p5 = por %p49_p2, %p48_p0  ;;  %p3476_p6 = por %p55_p4, %p54_p3 }
  0x13   : > { %4401 = sst [smem:[#allocation14_spill]] %s3470_s22  ;;  %p341_p8 = scmp.eq.s32.totalorder %s2574_s18, 1 }
  0x14   : > { %p2939_p10 = scmp.lt.s32.totalorder %s3340_s16, 2  ;;  %p3483_p11 = por %p335_p7, %p48_p0 }
  0x15   : > { %p3487_p12 = por %p341_p8, %p54_p3  ;;  %s420_s27 = sand.u32 1, %s3336_s15  }
  0x16   : > { %s4404_s25 = scalar_select %p3483_p11, 1, 0 }
  0x17   : > { %s4405_s26 = scalar_select %p3487_p12, 1, 0 }
  0x18   : > { %s2706_s28 = sshll.u32 %s3340_s16, 12  ;;  %s2577_s20 = sshll.u32 %s420_s27, 8 }
  0x19   : > { %s4406_s0 = sld [smem:[#allocation15_spill]]  ;;  %s424_s18 = scalar_lea.vmem [#allocation2], %s2577_s20 }
  0x1a   : > { %s432_s29 = sshll.u32 %s424_s18, 4  ;;  %p3500_p13 = pnand %p2939_p10, %p3472_p5  ;;  %s3504_s29 = int_to_ptr.vmem [resolvable:$true] %s432_s29 }
  0x1b   : > { %s3506_s15 = scalar_lea.sflag [#allocation3], %s420_s27 }
  0x1c   : > { %p3214_p1 = pneg %p3500_p13 }
  0x1f   : > { %s3496_s19 = scalar_lea.hbm %s4406_s0, %s2706_s28  ;;  %s3217_s20 = scalar_lea.hbm %s4406_s0, 8192 }
  0x20   : > { %s3212_s22 = scalar_lea.hbm %s3496_s19, 4096  ;;  %p3218_p4 = scmp.lt.u32.totalorder %s3496_s19, %s4406_s0 }
  0x21   : > { %p3213_p0 = scmp.ne.s32.totalorder %s3496_s19, %s3212_s22  ;;  %p3219_p5 = scmp.lt.u32.totalorder %s3217_s20, %s3212_s22 }
  0x22   : > { %p3221_p8 = scmp.lt.u32.totalorder %s3212_s22, %s3496_s19 }
  0x23   : > { %p3215_p2 = pnand %p3214_p1, %p3213_p0  ;;  %p3220_p7 = por %p3219_p5, %p3218_p4 }
  0x25   : > { %p3216_p3 = pneg %p3215_p2  ;;  %p3222_p10 = por %p3221_p8, %p3220_p7 }
  0x27   : > { %p3223_p9 = pnand %p3222_p10, %p3216_p3 }
  0x29   : > { %3226 = shalt.err (!%p3223_p9)
}
  0x2a   : > { %s3227_s27 = scalar_lea.vmem %s3504_s29, 4096  ;;  %s3342_s28 = smov [#allocation2]  }
  0x2b   : > { %p3228_p0 = scmp.ne.s32.totalorder %s3504_s29, %s3227_s27  ;;  %s3232_s23 = sshll.u32 %s3342_s28, 4  ;;  %s3233_s23 = int_to_ptr.vmem [resolvable:$false] %s3232_s23 }
  0x2c   : > { %s3234_s21 = scalar_lea.vmem %s3233_s23, 8192  ;;  %p3235_p11 = scmp.lt.s32.totalorder %s3504_s29, %s3233_s23 }
  0x2d   : > { %p3230_p2 = pnand %p3228_p0, %p3214_p1  ;;  %p3236_p4 = scmp.lt.s32.totalorder %s3234_s21, %s3227_s27 }
  0x2f   : > { %p3231_p12 = pneg %p3230_p2  ;;  %p3237_p5 = por %p3236_p4, %p3235_p11 }
  0x31   : > { %p3238_p7 = pnand %p3237_p5, %p3231_p12 }
  0x33   : > { %3241 = shalt.err (!%p3238_p7)
}
  0x34   : > { %s3343_s22 = smov 256   ;;  %s3344_s20 = smov 16  }
  0x35   : > { %2931 = dma.hbm_to_vmem [thread:$0]  (!%p3500_p13), %s3496_s19, 4096, %s3504_s29, %s3506_s15, %s3343_s22, %s3343_s22, %s3344_s20  }
  0x36   : > { %p2581_p9 = scmp.ge.s32.totalorder %s3340_s16, 1  ;;  %p449_p1 = scmp.lt.s32.totalorder %s3340_s16, 3 }
  0x38   : > { %p450_p3 = pnand %p2581_p9, %p449_p1 }
  0x39   : > { %s3537_s18 = sand.u32 (!%p450_p3), 1, %s3332_s30  }
  0x3a   : > { %453 = sbr.rel (%p450_p3) target bundleno = 1246 (0x4de), region = 72  ;;  %s2582_s27 = sshll.u32 (!%p450_p3), %s3537_s18, 8 }
  0x3b   : > { %s456_s28 = scalar_lea.sflag (!%p450_p3), [#allocation3], %s3537_s18  ;;  %s3543_s23 = scalar_lea.vmem (!%p450_p3), [#allocation2], %s2582_s27 }
  0x41   : > { %3315 = dma.done.wait (%p3476_p6), %s456_s28, 4096  }
  0x42   : > { %3317 = vsyncadd (%p3476_p6), %s456_s28, 4294963200  ;;  %s2585_s14 = sshll.u32 %s3454_s17, 4  ;;  %vm654_vm0 = vcmask 1041408   ;;  %v628_v0 = vld [vmem:[%s4378_s3] sm:$0x3]  ;;  %vm629_vm1 = vcmask 31744  }
  0x43   : > { %p516_p11 = scmp.lt.s32.totalorder %s2585_s14, 31  ;;  %2920 = vmatprep.subr.msk.bf16.mxu0 %vm654_vm0, %v628_v0  ;;  %v656_v1 = vsel %vm654_vm0, %v628_v0, 0  ;;  %v3026_v2 = vld [vmem:[%s4377_s2 + $0x40] sm:$0xff]   ;;  %v3028_v10 = vld [vmem:[%s4377_s2 + $0x48] sm:$0xff]   ;;  %v3030_v12 = vld [vmem:[%s4377_s2 + $0x50] sm:$0xff]   ;;  %vm1018_vm2 = vcmask 261120  }
  0x44   : > { %2821 = vmatpush3.bf16.msra.mxu0 %v656_v1  ;;  %v3027_v6 = vld [vmem:[%s4377_s2] sm:$0xff]   ;;  %2904 = vmatprep.subr.bf16.mxu1 %v3026_v2  ;;  %v3029_v11 = vld [vmem:[%s4377_s2 + $0x8] sm:$0xff]   ;;  %v3031_v16 = vld [vmem:[%s4377_s2 + $0x10] sm:$0xff]   ;;  %vm1465_vm3 = vcmask 1040384   ;;  %vm2076_vm4 = vcmask 1045504   ;;  %s3348_s19 = smov 120  }
  0x45   : > { %s4420_s14 = smov (!%p516_p11, %s2585_s14), 31  ;;  %2719 = vmatprep.subr.bf16.mxu0 %v3026_v2  ;;  %2912 = vmatpush3.bf16.msra.mxu1 %v3027_v6  ;;  %v3032_v19 = vld [vmem:[%s4377_s2 + $0x58] sm:$0xff]   ;;  %v3034_v24 = vld [vmem:[%s4377_s2 + $0x60] sm:$0xff]   ;;  %v3036_v29 = vld [vmem:[%s4377_s2 + $0x68] sm:$0xff]   ;;  %vm1396_vm5 = vcmask 113664   ;;  %vm1440_vm6 = vcmask 146432  }
  0x46   : > { %s2586_s29 = sshll.u32 %s4420_s14, 3  ;;  %2905 = vmatprep.subr.bf16.mxu1 %v3028_v10  ;;  %v3033_v21 = vld [vmem:[%s4377_s2 + $0x18] sm:$0xff]   ;;  %v3035_v28 = vld [vmem:[%s4377_s2 + $0x20] sm:$0xff]   ;;  %v3037_v34 = vld [vmem:[%s4377_s2 + $0x28] sm:$0xff]   ;;  %s3346_s14 = smov 114   ;;  %vm2043_vm7 = vcmask 48128  }
  0x47   : > { %s3553_s21 = scalar_lea.vmem %s4376_s1, %s2586_s29  ;;  %v3038_v35 = vld [vmem:[%s4377_s2 + $0x70] sm:$0xff]   ;;  %v545_v36 = vld [vmem:[%s3543_s23 + $0x28] sm:$0xff]  ;;  %v547_v37 = vld [vmem:[%s3543_s23 + $0x38] sm:$0xff]  ;;  %s3345_s29 = smov 10   ;;  %vm2337_vm8 = vcmask 228352   ;;  %vm2354_vm9 = vcmask 293888  }
  0x48   : > { %v3562_v3 = vld [vmem:[%s3553_s21] sm:$0xff]  ;;  %v3565_v4 = vld [vmem:[%s3553_s21 + $0x8] sm:$0xff]  ;;  %v3573_v7 = vld [vmem:[%s3553_s21 + $0x10] sm:$0xff]  ;;  %v575_v40 = vpack.c.bf16 %v547_v37, %v545_v36  ;;  %s3349_s28 = smov 28   ;;  %s3351_s24 = smov 42   ;;  %vm2371_vm10 = vcmask 343040  }
  0x49   : > { %v620_v5 = vpack.c.bf16 %v3565_v4, %v3562_v3  ;;  %v3576_v8 = vld [vmem:[%s3553_s21 + $0x18] sm:$0xff]  ;;  %v3592_v13 = vld [vmem:[%s3553_s21 + $0x20] sm:$0xff]  ;;  %v3595_v14 = vld [vmem:[%s3553_s21 + $0x28] sm:$0xff]  ;;  %2913 = vmatpush3.bf16.msra.mxu1 %v3029_v11  ;;  %1208 = vrot.lane.b32.xlu1 %v3573_v7, %s3345_s29  ;;  %vm2388_vm11 = vcmask 367616   ;;  %s4186_s15 = scalar_lea.vmem [#allocation6], %s2582_s27  ;;  %s2707_s27 = sshll.u32 %s3454_s17, 11 }
  0x4a   : > { %v621_v9 = vpack.c.bf16 %v3576_v8, %v3573_v7  ;;  %v622_v15 = vpack.c.bf16 %v3595_v14, %v3592_v13  ;;  %v3603_v17 = vld [vmem:[%s3553_s21 + $0x30] sm:$0xff]  ;;  %v3606_v18 = vld [vmem:[%s3553_s21 + $0x38] sm:$0xff]  ;;  %2906 = vmatprep.subr.bf16.mxu1 %v3030_v12  ;;  %v3618_v22 = vld [vmem:[%s3553_s21 + $0x40] sm:$0xff]  ;;  %891 = vmatprep.mubr.bf16.mxu1 %v575_v40  ;;  %s4266_s20 = scalar_lea.hbm %s4388_s13, %s2707_s27  ;;  %p4408_p12 = scmp.ne.s32.totalorder %s4404_s25, 0 }
  0x4b   : > { %2822 = vmatprep.mubr.msk.bf16.mxu0 %vm629_vm1, %v620_v5  ;;  %v623_v20 = vpack.c.bf16 %v3606_v18, %v3603_v17  ;;  %v3621_v23 = vld [vmem:[%s3553_s21 + $0x48] sm:$0xff]  ;;  %v3630_v26 = vld [vmem:[%s3553_s21 + $0x50] sm:$0xff]  ;;  %v3634_v27 = vld [vmem:[%s3553_s21 + $0x58] sm:$0xff]  ;;  %1204 = vrot.lane.b32.xlu0 %v3562_v3, %s3345_s29 }
  0x4c   : > { %2823 = vmatmul.mubr.msk.bf16.vlgmr.msra.gmra.mrb[0].mxu0 %vm629_vm1, %v621_v9  ;;  %v624_v25 = vpack.c.bf16 %v3621_v23, %v3618_v22  ;;  %v3643_v30 = vld [vmem:[%s3553_s21 + $0x60] sm:$0xff]  ;;  %v3646_v31 = vld [vmem:[%s3553_s21 + $0x68] sm:$0xff]  ;;  %v625_v32 = vpack.c.bf16 %v3634_v27, %v3630_v26  ;;  %v3663_v38 = vld [vmem:[%s3553_s21 + $0x70] sm:$0xff] }
  0x4d   : > { %2720 = vmatpush3.bf16.msra.mxu0 %v3027_v6  ;;  %2826 = vmatprep.mubr.msk.bf16.mxu0 %vm629_vm1, %v622_v15  ;;  %v626_v33 = vpack.c.bf16 %v3646_v31, %v3643_v30  ;;  %v3666_v39 = vld [vmem:[%s3553_s21 + $0x78] sm:$0xff]  ;;  %v3039_v41 = vld [vmem:[%s4377_s2 + $0x30] sm:$0xff]   ;;  %v541_v42 = vld [vmem:[%s3543_s23 + $0x8] sm:$0xff] }
  0x4e   : > { %2721 = vmatprep.subr.bf16.mxu0 %v3028_v10  ;;  %2914 = vmatpush3.bf16.msra.mxu1 %v3031_v16  ;;  %v543_v43 = vld [vmem:[%s3543_s23 + $0x18] sm:$0xff]  ;;  %v627_v45 = vpack.c.bf16 %v3666_v39, %v3663_v38  ;;  %v544_v48 = vld [vmem:[%s3543_s23 + $0x20] sm:$0xff]  ;;  %v546_v49 = vld [vmem:[%s3543_s23 + $0x30] sm:$0xff] }
  0x4f   : > { %2907 = vmatprep.subr.bf16.mxu1 %v3032_v19  ;;  %v3040_v44 = vld [vmem:[%s4377_s2 + $0x78] sm:$0xff]   ;;  %v573_v46 = vpack.c.bf16 %v543_v43, %v541_v42  ;;  %v549_v50 = vld [vmem:[%s3543_s23 + $0x48] sm:$0xff]  ;;  %v574_v52 = vpack.c.bf16 %v546_v49, %v544_v48  ;;  %v540_v53 = vld [vmem:[%s3543_s23] sm:$0xff]  ;;  %1210 = vrot.lane.b32.xlu1 %v3576_v8, %s3345_s29 }
  0x50   : > { %v3041_v47 = vld [vmem:[%s4377_s2 + $0x38] sm:$0xff]   ;;  %v542_v54 = vld [vmem:[%s3543_s23 + $0x10] sm:$0xff]  ;;  %v548_v57 = vld [vmem:[%s3543_s23 + $0x40] sm:$0xff]  ;;  %1206 = vrot.lane.b32.xlu0 %v3565_v4, %s3345_s29 }
  0x51   : > { %2722 = vmatpush3.bf16.msra.mxu0 %v3029_v11  ;;  %v551_v51 = vld [vmem:[%s3543_s23 + $0x58] sm:$0xff]  ;;  %v572_v56 = vpack.c.bf16 %v542_v54, %v540_v53  ;;  %v550_v58 = vld [vmem:[%s3543_s23 + $0x50] sm:$0xff]  ;;  %v553_v59 = vld [vmem:[%s3543_s23 + $0x68] sm:$0xff] }
  0x52   : > { %2723 = vmatprep.subr.bf16.mxu0 %v3030_v12  ;;  %2915 = vmatpush3.bf16.msra.mxu1 %v3033_v21  ;;  %v577_v55 = vpack.c.bf16 %v551_v51, %v549_v50  ;;  %v555_v60 = vld [vmem:[%s3543_s23 + $0x78] sm:$0xff]  ;;  %v576_v61 = vpack.c.bf16 %v550_v58, %v548_v57  ;;  %v552_v63 = vld [vmem:[%s3543_s23 + $0x60] sm:$0xff]  ;;  %v554_v0 = vld [vmem:[%s3543_s23 + $0x70] sm:$0xff] }
  0x53   : > { %2908 = vmatprep.subr.bf16.mxu1 %v3034_v24  ;;  %v579_v62 = vpack.c.bf16 %v555_v60, %v553_v59  ;;  %v557_v1 = vld [vmem:[%s3543_s23 + $0x88] sm:$0xff]  ;;  %v559_v2 = vld [vmem:[%s3543_s23 + $0x98] sm:$0xff]  ;;  %v578_v5 = vpack.c.bf16 %v554_v0, %v552_v63  ;;  %v556_v9 = vld [vmem:[%s3543_s23 + $0x80] sm:$0xff]  ;;  %1214 = vrot.lane.b32.xlu1 %v3595_v14, %s3345_s29 }
  0x54   : > { %2827 = vmatmul.mubr.msk.bf16.gmra.mrb[4].mxu0 %vm629_vm1, %v623_v20  ;;  %v581_v6 = vpack.c.bf16 %v559_v2, %v557_v1  ;;  %v558_v10 = vld [vmem:[%s3543_s23 + $0x90] sm:$0xff]  ;;  %v561_v11 = vld [vmem:[%s3543_s23 + $0xa8] sm:$0xff]  ;;  %v563_v12 = vld [vmem:[%s3543_s23 + $0xb8] sm:$0xff]  ;;  %1212 = vrot.lane.b32.xlu0 %v3592_v13, %s3345_s29 }
  0x55   : > { %2724 = vmatpush3.bf16.msra.mxu0 %v3031_v16  ;;  %2830 = vmatprep.mubr.msk.bf16.mxu0 %vm629_vm1, %v624_v25  ;;  %v580_v15 = vpack.c.bf16 %v558_v10, %v556_v9  ;;  %v583_v16 = vpack.c.bf16 %v563_v12, %v561_v11  ;;  %v562_v20 = vld [vmem:[%s3543_s23 + $0xb0] sm:$0xff]  ;;  %v568_v37 = vld [vmem:[%s3543_s23 + $0xe0] sm:$0xff]  ;;  %v3043_v43 = vld [vmem:[%s4380_s5 + $0x8] sm:$0xff]  }
  0x56   : > { %2725 = vmatprep.subr.bf16.mxu0 %v3032_v19  ;;  %2916 = vmatpush3.bf16.msra.mxu1 %v3035_v28  ;;  %v560_v19 = vld [vmem:[%s3543_s23 + $0xa0] sm:$0xff]  ;;  %v570_v40 = vld [vmem:[%s3543_s23 + $0xf0] sm:$0xff] }
  0x57   : > { %2909 = vmatprep.subr.bf16.mxu1 %v3036_v29  ;;  %v582_v25 = vpack.c.bf16 %v562_v20, %v560_v19  ;;  %v3042_v42 = vld [vmem:[%s4380_s5] sm:$0xff]   ;;  %1218 = vrot.lane.b32.xlu1 %v3606_v18, %s3345_s29 }
  0x58   : > { %1216 = vrot.lane.b32.xlu0 %v3603_v17, %s3345_s29  ;;  %v3751_v0 = vld [vmem:[%s4379_s4] ss:$0 sm:$0xff] }
  0x59   : > { %2726 = vmatpush3.bf16.msra.mxu0 %v3033_v21  ;;  %v565_v21 = vld [vmem:[%s3543_s23 + $0xc8] sm:$0xff] }
  0x5a   : > { %2727 = vmatprep.subr.bf16.mxu0 %v3034_v24  ;;  %2917 = vmatpush3.bf16.msra.mxu1 %v3037_v34  ;;  %v567_v24 = vld [vmem:[%s3543_s23 + $0xd8] sm:$0xff] }
  0x5b   : > { %2910 = vmatprep.subr.bf16.mxu1 %v3038_v35  ;;  %1222 = vrot.lane.b32.xlu1 %v3621_v23, %s3345_s29 }
  0x5c   : > { %2831 = vmatmul.mubr.msk.bf16.gmra.mrb[8].mxu0 %vm629_vm1, %v625_v32  ;;  %v566_v32 = vld [vmem:[%s3543_s23 + $0xd0] sm:$0xff]  ;;  %1220 = vrot.lane.b32.xlu0 %v3618_v22, %s3345_s29 }
  0x5d   : > { %2728 = vmatpush3.bf16.msra.mxu0 %v3035_v28  ;;  %2834 = vmatprep.mubr.msk.bf16.mxu0 %vm629_vm1, %v626_v33  ;;  %v585_v28 = vpack.c.bf16 %v567_v24, %v565_v21  ;;  %v569_v33 = vld [vmem:[%s3543_s23 + $0xe8] sm:$0xff] }
  0x5e   : > { %2729 = vmatprep.subr.bf16.mxu0 %v3036_v29  ;;  %2918 = vmatpush3.bf16.msra.mxu1 %v3039_v41  ;;  %v564_v29 = vld [vmem:[%s3543_s23 + $0xc0] sm:$0xff] }
  0x5f   : > { %2911 = vmatprep.subr.bf16.mxu1 %v3040_v44  ;;  %1226 = vrot.lane.b32.xlu1 %v3634_v27, %s3345_s29 }
  0x60   : > { %1224 = vrot.lane.b32.xlu0 %v3630_v26, %s3345_s29 }
  0x61   : > { %2730 = vmatpush3.bf16.msra.mxu0 %v3037_v34  ;;  %v571_v34 = vld [vmem:[%s3543_s23 + $0xf8] sm:$0xff] }
  0x62   : > { %2731 = vmatprep.subr.bf16.mxu0 %v3038_v35  ;;  %2919 = vmatpush3.bf16.msra.mxu1 %v3041_v47  ;;  %v584_v35 = vpack.c.bf16 %v566_v32, %v564_v29  ;;  %v587_v36 = vpack.c.bf16 %v571_v34, %v569_v33 }
  0x63   : > { %1230 = vrot.lane.b32.xlu1 %v3646_v31, %s3345_s29 }
  0x64   : > { %2835 = vmatmul.mubr.msk.bf16.gmra.mrb[12].mxu0 %vm629_vm1, %v627_v45  ;;  %1228 = vrot.lane.b32.xlu0 %v3643_v30, %s3345_s29 }
  0x65   : > { %2732 = vmatpush3.bf16.msra.mxu0 %v3039_v41  ;;  %883 = vmatprep.mubr.bf16.mxu0 %v573_v46  ;;  %v586_v41 = vpack.c.bf16 %v570_v40, %v568_v37 }
  0x66   : > { %2733 = vmatprep.subr.bf16.mxu0 %v3040_v44  ;;  %892 = vmatmul.mubr.bf16.vlgmr.msra.gmra.mrb[0].mxu1 %v574_v52 }
  0x67   : > { %899 = vmatprep.mubr.bf16.mxu1 %v577_v55  ;;  %1234 = vrot.lane.b32.xlu1 %v3666_v39, %s3345_s29 }
  0x68   : > { %1232 = vrot.lane.b32.xlu0 %v3663_v38, %s3345_s29  ;;  %s3347_s29 = smov 14  }
  0x69   : > { %2734 = vmatpush3.bf16.msra.mxu0 %v3041_v47 }
  0x6a   : > { %2838 = vmatprep.subr.bf16.mxu0 %v3042_v42 }
  0x6c   : > { %884 = vmatmul.mubr.bf16.vlgmr.msra.gmra.mrb[16].mxu0 %v572_v56 }
  0x6d   : > { %2839 = vmatpush3.bf16.msra.mxu0 %v3042_v42 }
  0x6e   : > { %900 = vmatmul.mubr.bf16.gmra.mrb[4].mxu1 %v576_v61  ;;  %2840 = vmatprep.subr.bf16.mxu0 %v3043_v43 }
  0x6f   : > { %907 = vmatprep.mubr.bf16.mxu1 %v579_v62 }
  0x71   : > { %2841 = vmatpush3.bf16.msra.mxu0 %v3043_v43 }
  0x76   : > { %908 = vmatmul.mubr.bf16.gmra.mrb[8].mxu1 %v578_v5 }
  0x77   : > { %915 = vmatprep.mubr.bf16.mxu1 %v581_v6 }
  0x7e   : > { %916 = vmatmul.mubr.bf16.gmra.mrb[12].mxu1 %v580_v15 }
  0x7f   : > { %923 = vmatprep.mubr.bf16.mxu1 %v583_v16 }
  0x86   : > { %924 = vmatmul.mubr.bf16.gmra.mrb[16].mxu1 %v582_v25 }
  0x87   : > { %931 = vmatprep.mubr.bf16.mxu1 %v585_v28 }
  0x8e   : > { %932 = vmatmul.mubr.bf16.gmra.mrb[20].mxu1 %v584_v35 }
  0x8f   : > { %939 = vmatprep.mubr.bf16.mxu1 %v587_v36 }
  0x96   : > { %940 = vmatmul.mubr.bf16.gmra.mrb[24].mxu1 %v586_v41 }
 0x11f   : > { %v2824_v44 = vpop.f32.mrb[0].mxu0 }
 0x120   : > { %v692_v45 = vpop.f32.mrb[1].mxu0 }
 0x121   : > { %v2825_v46 = vpop.f32.mrb[2].mxu0 }
 0x122   : > { %v695_v47 = vpop.f32.mrb[3].mxu0 }
 0x127   : > { %v2828_v48 = vpop.f32.mrb[4].mxu0 }
 0x128   : > { %v708_v49 = vpop.f32.mrb[5].mxu0 }
 0x129   : > { %v2829_v50 = vpop.f32.mrb[6].mxu0 }
 0x12a   : > { %v711_v51 = vpop.f32.mrb[7].mxu0 }
 0x12f   : > { %v3732_v52 = vpop.f32.mrb[8].mxu0 }
 0x130   : > { %v3734_v53 = vpop.f32.mrb[9].mxu0 }
 0x131   : > { %v3736_v54 = vpop.f32.mrb[10].mxu0 }
 0x132   : > { %v3738_v55 = vpop.f32.mrb[11].mxu0 }
 0x137   : > { %v3740_v56 = vpop.f32.mrb[12].mxu0 }
 0x138   : > { %v3742_v57 = vpop.f32.mrb[13].mxu0 }
 0x139   : > { %v3744_v58 = vpop.f32.mrb[14].mxu0  ;;  %v2741_v60 = vpop.f32.mrb[0].mxu1 }
 0x13a   : > { %v3746_v59 = vpop.f32.mrb[15].mxu0  ;;  %v2742_v61 = vpop.f32.mrb[1].mxu1 }
 0x13b   : > { %v2743_v62 = vadd.f32 %v2742_v61, %v2741_v60  ;;  %v2744_v63 = vpop.f32.mrb[2].mxu1 }
 0x13c   : > { %v2745_v2 = vpop.f32.mrb[3].mxu1 }
 0x13d   : > { %v894_v5 = vadd.f32 %v2824_v44, %v2743_v62  ;;  %v2746_v9 = vadd.f32 %v2745_v2, %v2744_v63 }
 0x13f   : > { %v2735_v1 = vpop.f32.mrb[16].mxu0  ;;  %v957_v12 = vadd.f32 %v3751_v0, %v894_v5  ;;  %v897_v15 = vadd.f32 %v2825_v46, %v2746_v9 }
 0x140   : > { %v2736_v6 = vpop.f32.mrb[17].mxu0 }
 0x141   : > { %v2737_v10 = vadd.f32 %v2736_v6, %v2735_v1  ;;  %v2738_v11 = vpop.f32.mrb[18].mxu0  ;;  %v958_v21 = vadd.f32 %v3751_v0, %v897_v15  ;;  %v2747_v24 = vpop.f32.mrb[4].mxu1  ;;  %v973_v32 = vmax.f32 %v957_v12, 0.0 }
 0x142   : > { %v2739_v16 = vpop.f32.mrb[19].mxu0  ;;  %v2748_v29 = vpop.f32.mrb[5].mxu1 }
 0x143   : > { %v886_v19 = vadd.f32 %v2737_v10, %v692_v45  ;;  %v2740_v20 = vadd.f32 %v2739_v16, %v2738_v11  ;;  %v974_v33 = vmax.f32 %v958_v21, 0.0  ;;  %v2749_v34 = vadd.f32 %v2748_v29, %v2747_v24  ;;  %v2750_v35 = vpop.f32.mrb[6].mxu1 }
 0x144   : > { %v2751_v37 = vpop.f32.mrb[7].mxu1 }
 0x145   : > { %v955_v25 = vadd.f32 %v3751_v0, %v886_v19  ;;  %v889_v28 = vadd.f32 %v2740_v20, %v695_v47  ;;  %v988_v40 = vpack.c.bf16 %v974_v33, %v973_v32  ;;  %v902_v41 = vadd.f32 %v2749_v34, %v708_v49 }
 0x146   : > { %v2752_v42 = vadd.f32 %v2751_v37, %v2750_v35 }
 0x147   : > { %v956_v36 = vadd.f32 %v3751_v0, %v889_v28  ;;  %v971_v43 = vmax.f32 %v955_v25, 0.0  ;;  %v959_v45 = vadd.f32 %v3751_v0, %v902_v41 }
 0x148   : > { %v905_v46 = vadd.f32 %v2752_v42, %v711_v51 }
 0x149   : > { %v972_v44 = vmax.f32 %v956_v36, 0.0  ;;  %v2753_v61 = vpop.f32.mrb[8].mxu1  ;;  %v975_v63 = vmax.f32 %v959_v45, 0.0 }
 0x14a   : > { %v960_v47 = vadd.f32 %v3751_v0, %v905_v46  ;;  %v2754_v62 = vpop.f32.mrb[9].mxu1 }
 0x14b   : > { %v987_v60 = vpack.c.bf16 %v972_v44, %v971_v43  ;;  %v2755_v2 = vadd.f32 %v2754_v62, %v2753_v61  ;;  %v2756_v49 = vpop.f32.mrb[10].mxu1 }
 0x14c   : > { %v976_v1 = vmax.f32 %v960_v47, 0.0  ;;  %v2757_v5 = vpop.f32.mrb[11].mxu1 }
 0x14d   : > { %2842 = vmatprep.mubr.msk.bf16.mxu0 %vm1018_vm2, %v987_v60  ;;  %v910_v9 = vadd.f32 %v2828_v48, %v2755_v2  ;;  %v2758_v10 = vadd.f32 %v2757_v5, %v2756_v49 }
 0x14e   : > { %2843 = vmatmul.mubr.msk.bf16.vlgmr.msra.gmra.mrb[20].mxu0 %vm1018_vm2, %v988_v40  ;;  %v989_v6 = vpack.c.bf16 %v976_v1, %v975_v63 }
 0x14f   : > { %v961_v51 = vadd.f32 %v3751_v0, %v910_v9  ;;  %v913_v11 = vadd.f32 %v2829_v50, %v2758_v10 }
 0x150   : > { %2846 = vmatprep.mubr.msk.bf16.mxu0 %vm1018_vm2, %v989_v6 }
 0x151   : > { %v962_v12 = vadd.f32 %v3751_v0, %v913_v11  ;;  %v2759_v15 = vpop.f32.mrb[12].mxu1  ;;  %v977_v19 = vmax.f32 %v961_v51, 0.0 }
 0x152   : > { %v2760_v16 = vpop.f32.mrb[13].mxu1 }
 0x153   : > { %v978_v20 = vmax.f32 %v962_v12, 0.0  ;;  %v2761_v21 = vadd.f32 %v2760_v16, %v2759_v15  ;;  %v2762_v24 = vpop.f32.mrb[14].mxu1 }
 0x154   : > { %v2763_v25 = vpop.f32.mrb[15].mxu1 }
 0x155   : > { %v990_v28 = vpack.c.bf16 %v978_v20, %v977_v19  ;;  %v918_v29 = vadd.f32 %v2761_v21, %v3734_v53  ;;  %v2764_v32 = vadd.f32 %v2763_v25, %v2762_v24 }
 0x157   : > { %v963_v48 = vadd.f32 %v3751_v0, %v918_v29  ;;  %v921_v33 = vadd.f32 %v2764_v32, %v3738_v55  ;;  %2847 = vmatmul.mubr.msk.bf16.gmra.mrb[24].mxu0 %vm1018_vm2, %v990_v28 }
 0x159   : > { %v964_v50 = vadd.f32 %v3751_v0, %v921_v33  ;;  %v2765_v34 = vpop.f32.mrb[16].mxu1  ;;  %v979_v36 = vmax.f32 %v963_v48, 0.0  ;;  %v3044_v48 = vld [vmem:[%s4382_s7] sm:$0xff]  }
 0x15a   : > { %v2766_v35 = vpop.f32.mrb[17].mxu1  ;;  %2858 = vmatprep.subr.bf16.mxu0 %v3044_v48 }
 0x15b   : > { %v980_v37 = vmax.f32 %v964_v50, 0.0  ;;  %v2767_v40 = vadd.f32 %v2766_v35, %v2765_v34  ;;  %v2768_v41 = vpop.f32.mrb[18].mxu1  ;;  %2859 = vmatpush3.bf16.msra.mxu0 %v3044_v48 }
 0x15c   : > { %v2769_v42 = vpop.f32.mrb[19].mxu1 }
 0x15d   : > { %v991_v43 = vpack.c.bf16 %v980_v37, %v979_v36  ;;  %v926_v44 = vadd.f32 %v3732_v52, %v2767_v40  ;;  %v2770_v53 = vadd.f32 %v2769_v42, %v2768_v41 }
 0x15f   : > { %v965_v45 = vadd.f32 %v3751_v0, %v926_v44  ;;  %v929_v46 = vadd.f32 %v3736_v54, %v2770_v53  ;;  %2850 = vmatprep.mubr.msk.bf16.mxu0 %vm1018_vm2, %v991_v43 }
 0x161   : > { %v966_v55 = vadd.f32 %v3751_v0, %v929_v46  ;;  %v2771_v60 = vpop.f32.mrb[20].mxu1  ;;  %v981_v61 = vmax.f32 %v965_v45, 0.0 }
 0x162   : > { %v2772_v47 = vpop.f32.mrb[21].mxu1 }
 0x163   : > { %v982_v62 = vmax.f32 %v966_v55, 0.0  ;;  %v2773_v63 = vadd.f32 %v2772_v47, %v2771_v60  ;;  %v2774_v1 = vpop.f32.mrb[22].mxu1  ;;  %v1205_v47 = vpop.permute.xlu0 %1204 }
 0x164   : > { %v2775_v2 = vpop.f32.mrb[23].mxu1 }
 0x165   : > { %v992_v49 = vpack.c.bf16 %v982_v62, %v981_v61  ;;  %v934_v5 = vadd.f32 %v2773_v63, %v3742_v57  ;;  %v2776_v52 = vadd.f32 %v2775_v2, %v2774_v1  ;;  %v1209_v61 = vpop.permute.xlu1 %1208 }
 0x167   : > { %v967_v6 = vadd.f32 %v3751_v0, %v934_v5  ;;  %v937_v9 = vadd.f32 %v2776_v52, %v3746_v59  ;;  %2851 = vmatmul.mubr.msk.bf16.gmra.mrb[28].mxu0 %vm1018_vm2, %v992_v49 }
 0x169   : > { %v968_v54 = vadd.f32 %v3751_v0, %v937_v9  ;;  %v2777_v10 = vpop.f32.mrb[24].mxu1  ;;  %v983_v11 = vmax.f32 %v967_v6, 0.0  ;;  %v1207_v9 = vpop.permute.xlu0 %1206 }
 0x16a   : > { %v2778_v51 = vpop.f32.mrb[25].mxu1 }
 0x16b   : > { %v984_v12 = vmax.f32 %v968_v54, 0.0  ;;  %v2779_v15 = vadd.f32 %v2778_v51, %v2777_v10  ;;  %v2780_v16 = vpop.f32.mrb[26].mxu1 }
 0x16c   : > { %v2781_v19 = vpop.f32.mrb[27].mxu1 }
 0x16d   : > { %v993_v20 = vpack.c.bf16 %v984_v12, %v983_v11  ;;  %v942_v21 = vadd.f32 %v3740_v56, %v2779_v15  ;;  %v2782_v57 = vadd.f32 %v2781_v19, %v2780_v16  ;;  %v3045_v56 = vld [vmem:[%s4382_s7 + $0x8] ss:$0 sps:$4 sm:$0x11]   ;;  %v1211_v15 = vpop.permute.xlu1 %1210 }
 0x16e   : > { %2921 = vmatprep.subr.msk.bf16.mxu0 %vm1465_vm3, %v3045_v56  ;;  %v1467_v55 = vsel %vm1465_vm3, %v3045_v56, 0 }
 0x16f   : > { %v969_v24 = vadd.f32 %v3751_v0, %v942_v21  ;;  %v945_v25 = vadd.f32 %v3744_v58, %v2782_v57  ;;  %2854 = vmatprep.mubr.msk.bf16.mxu0 %vm1018_vm2, %v993_v20  ;;  %v3795_v58 = vld [vmem:[%s4381_s6] ss:$0 sm:$0xff]  ;;  %2861 = vmatpush3.bf16.msra.mxu0 %v1467_v55 }
 0x171   : > { %v970_v59 = vadd.f32 %v3751_v0, %v945_v25  ;;  %v985_v28 = vmax.f32 %v969_v24, 0.0  ;;  %v1215_v48 = vpop.permute.xlu1 %1214 }
 0x173   : > { %v986_v29 = vmax.f32 %v970_v59, 0.0 }
 0x175   : > { %v994_v32 = vpack.c.bf16 %v986_v29, %v985_v28  ;;  %v1213_v29 = vpop.permute.xlu0 %1212 }
 0x177   : > { %2855 = vmatmul.mubr.msk.bf16.gmra.mrb[32].mxu0 %vm1018_vm2, %v994_v32 }
 0x221   : > { %v2844_v0 = vpop.f32.mrb[20].mxu0 }
 0x222   : > { %v3798_v33 = vadd.f32 %v2844_v0, %v3795_v58  ;;  %v1077_v50 = vpop.f32.mrb[21].mxu0  ;;  %v2986_v0 = vpack.i.bf16 %v3565_v4, %v3562_v3 }
 0x223   : > { %v3801_v34 = vadd.f32 %v3795_v58, %v1077_v50  ;;  %v2845_v35 = vpop.f32.mrb[22].mxu0  ;;  %v2991_v50 = vpack.i.bf16 %v3576_v8, %v3573_v7 }
 0x224   : > { %v1142_v36 = vmul.f32 0.5, %v3798_v33  ;;  %v3805_v37 = vadd.f32 %v2845_v35, %v3795_v58  ;;  %v1080_v40 = vpop.f32.mrb[23].mxu0  ;;  %v1217_v35 = vpop.permute.xlu0 %1216 }
 0x225   : > { %v1140_v41 = vmul.f32 0.5, %v3801_v34  ;;  %v3809_v42 = vadd.f32 %v3795_v58, %v1080_v40 }
 0x226   : > { %v1160_v43 = vmul.f32 1.442695, %v1142_v36  ;;  %v1143_v44 = vmul.f32 0.5, %v3805_v37 }
 0x227   : > { %v1156_v53 = vmul.f32 1.442695, %v1140_v41  ;;  %v1141_v45 = vmul.f32 0.5, %v3809_v42 }
 0x228   : > { %3052 = vpow2.f32 %v1160_v43  ;;  %v1162_v46 = vmul.f32 1.442695, %v1143_v44  ;;  %v1219_v44 = vpop.permute.xlu1 %1218 }
 0x229   : > { %3054 = vpow2.f32 %v1156_v53  ;;  %v1158_v60 = vmul.f32 1.442695, %v1141_v45 }
 0x22a   : > { %3056 = vpow2.f32 %v1162_v46  ;;  %v2848_v62 = vpop.f32.mrb[24].mxu0 }
 0x22b   : > { %3058 = vpow2.f32 %v1158_v60  ;;  %v3815_v63 = vadd.f32 %v2848_v62, %v3795_v58  ;;  %v1093_v1 = vpop.f32.mrb[25].mxu0 }
 0x22c   : > { %v3818_v2 = vadd.f32 %v3795_v58, %v1093_v1  ;;  %v2849_v49 = vpop.f32.mrb[26].mxu0 }
 0x22d   : > { %v1146_v5 = vmul.f32 0.5, %v3815_v63  ;;  %v3822_v52 = vadd.f32 %v2849_v49, %v3795_v58  ;;  %v1096_v6 = vpop.f32.mrb[27].mxu0 }
 0x22e   : > { %v1144_v54 = vmul.f32 0.5, %v3818_v2  ;;  %v3826_v10 = vadd.f32 %v3795_v58, %v1096_v6 }
 0x22f   : > { %v1168_v11 = vmul.f32 1.442695, %v1146_v5  ;;  %v1147_v12 = vmul.f32 0.5, %v3822_v52 }
 0x230   : > { %v1164_v19 = vmul.f32 1.442695, %v1144_v54  ;;  %v1145_v21 = vmul.f32 0.5, %v3826_v10 }
 0x231   : > { %3060 = vpow2.f32 %v1168_v11  ;;  %v1170_v24 = vmul.f32 1.442695, %v1147_v12  ;;  %v2996_v12 = vpack.i.bf16 %v3595_v14, %v3592_v13 }
 0x232   : > { %v3053_v51 = vpop.eup %3052  ;;  %3062 = vpow2.f32 %v1164_v19  ;;  %v1166_v25 = vmul.f32 1.442695, %v1145_v21  ;;  %v1223_v19 = vpop.permute.xlu1 %1222 }
 0x233   : > { %v3055_v16 = vpop.eup %3054  ;;  %v1254_v20 = vmul.f32 %v3053_v51, %v1209_v61  ;;  %3064 = vpow2.f32 %v1170_v24 }
 0x234   : > { %v3057_v57 = vpop.eup %3056  ;;  %v1252_v32 = vmul.f32 %v3055_v16, %v1205_v47  ;;  %3066 = vpow2.f32 %v1166_v25  ;;  %v3001_v16 = vpack.i.bf16 %v3606_v18, %v3603_v17 }
 0x235   : > { %v1255_v59 = vmul.f32 %v3057_v57, %v1211_v15  ;;  %1288 = vrot.lane.b32.xlu0 %v1254_v20, %s3346_s14  ;;  %v3059_v28 = vpop.eup %3058  ;;  %v1221_v15 = vpop.permute.xlu0 %1220 }
 0x236   : > { %v1253_v56 = vmul.f32 %v3059_v28, %v1207_v9  ;;  %v1227_v14 = vpop.permute.xlu1 %1226 }
 0x237   : > { %1290 = vrot.lane.b32.xlu1 %v1255_v59, %s3346_s14 }
 0x239   : > { %1284 = vrot.lane.b32.xlu0 %v1252_v32, %s3346_s14  ;;  %v1225_v20 = vpop.permute.xlu0 %1224 }
 0x23a   : > { %v2852_v36 = vpop.f32.mrb[28].mxu0 }
 0x23b   : > { %1286 = vrot.lane.b32.xlu1 %v1253_v56, %s3346_s14  ;;  %v3061_v40 = vpop.eup %3060  ;;  %v3840_v41 = vadd.f32 %v2852_v36, %v3795_v58  ;;  %v1109_v43 = vpop.f32.mrb[29].mxu0 }
 0x23c   : > { %v3063_v53 = vpop.eup %3062  ;;  %v1258_v45 = vmul.f32 %v3061_v40, %v1217_v35  ;;  %v3843_v3 = vadd.f32 %v3795_v58, %v1109_v43  ;;  %v2853_v4 = vpop.f32.mrb[30].mxu0 }
 0x23d   : > { %2987 = vrot.lane.b32.xlu0 %v2986_v0, %s3347_s29  ;;  %v3065_v7 = vpop.eup %3064  ;;  %v1150_v8 = vmul.f32 0.5, %v3840_v41  ;;  %v3848_v46 = vadd.f32 %v2853_v4, %v3795_v58  ;;  %v1112_v55 = vpop.f32.mrb[31].mxu0  ;;  %v1256_v5 = vmul.f32 %v3063_v53, %v1213_v29 }
 0x23e   : > { %v1148_v60 = vmul.f32 0.5, %v3843_v3  ;;  %v1259_v47 = vmul.f32 %v3065_v7, %v1219_v44  ;;  %v3852_v61 = vadd.f32 %v3795_v58, %v1112_v55  ;;  %v3067_v62 = vpop.eup %3066  ;;  %v3011_v55 = vpack.i.bf16 %v3634_v27, %v3630_v26 }
 0x23f   : > { %2992 = vrot.lane.b32.xlu1 %v2991_v50, %s3347_s29  ;;  %v1176_v1 = vmul.f32 1.442695, %v1150_v8  ;;  %v1151_v49 = vmul.f32 0.5, %v3848_v46  ;;  %v1257_v51 = vmul.f32 %v3067_v62, %v1215_v48  ;;  %v1229_v8 = vpop.permute.xlu0 %1228  ;;  %v3016_v27 = vpack.i.bf16 %v3646_v31, %v3643_v30 }
 0x240   : > { %v1172_v6 = vmul.f32 1.442695, %v1148_v60  ;;  %v1149_v9 = vmul.f32 0.5, %v3852_v61  ;;  %v1231_v60 = vpop.permute.xlu1 %1230 }
 0x241   : > { %1296 = vrot.lane.b32.xlu0 %v1258_v45, %s3346_s14  ;;  %3068 = vpow2.f32 %v1176_v1  ;;  %v1178_v54 = vmul.f32 1.442695, %v1151_v49 }
 0x242   : > { %3070 = vpow2.f32 %v1172_v6  ;;  %v1174_v11 = vmul.f32 1.442695, %v1149_v9 }
 0x243   : > { %1298 = vrot.lane.b32.xlu1 %v1259_v47, %s3346_s14  ;;  %3072 = vpow2.f32 %v1178_v54  ;;  %v1233_v47 = vpop.permute.xlu0 %1232  ;;  %v3021_v54 = vpack.i.bf16 %v3666_v39, %v3663_v38 }
 0x244   : > { %3074 = vpow2.f32 %v1174_v11  ;;  %v1235_v1 = vpop.permute.xlu1 %1234 }
 0x245   : > { %1292 = vrot.lane.b32.xlu0 %v1256_v5, %s3346_s14 }
 0x247   : > { %1294 = vrot.lane.b32.xlu1 %v1257_v51, %s3346_s14  ;;  %v1987_v51 = vld [vmem:[%s4386_s11] sm:$0x3f] }
 0x248   : > { %2878 = vmatprep.subr.msk.mxu0 %vm2076_vm4, %v1987_v51 }
 0x249   : > { %2997 = vrot.lane.b32.xlu0 %v2996_v12, %s3347_s29 }
 0x24a   : > { %v2856_v21 = vpop.f32.mrb[32].mxu0 }
 0x24b   : > { %3002 = vrot.lane.b32.xlu1 %v3001_v16, %s3347_s29  ;;  %v3069_v57 = vpop.eup %3068  ;;  %v3867_v24 = vadd.f32 %v2856_v21, %v3795_v58  ;;  %v1125_v13 = vpop.f32.mrb[33].mxu0 }
 0x24c   : > { %v3071_v25 = vpop.eup %3070  ;;  %v1262_v59 = vmul.f32 %v3069_v57, %v1225_v20  ;;  %v3870_v28 = vadd.f32 %v3795_v58, %v1125_v13  ;;  %v2857_v17 = vpop.f32.mrb[34].mxu0 }
 0x24d   : > { %v3073_v18 = vpop.eup %3072  ;;  %v1154_v29 = vmul.f32 0.5, %v3867_v24  ;;  %v3874_v32 = vadd.f32 %v2857_v17, %v3795_v58  ;;  %v1128_v48 = vpop.f32.mrb[35].mxu0  ;;  %v1260_v43 = vmul.f32 %v3071_v25, %v1221_v15 }
 0x24e   : > { %v1152_v56 = vmul.f32 0.5, %v3870_v28  ;;  %v1263_v0 = vmul.f32 %v3073_v18, %v1227_v14  ;;  %v3878_v50 = vadd.f32 %v3795_v58, %v1128_v48  ;;  %1304 = vrot.lane.b32.xlu0 %v1262_v59, %s3346_s14  ;;  %v3075_v35 = vpop.eup %3074  ;;  %v3006_v58 = vpack.i.bf16 %v3621_v23, %v3618_v22 }
 0x24f   : > { %v1184_v36 = vmul.f32 1.442695, %v1154_v29  ;;  %v1155_v40 = vmul.f32 0.5, %v3874_v32  ;;  %v1261_v4 = vmul.f32 %v3075_v35, %v1223_v19 }
 0x250   : > { %v1180_v44 = vmul.f32 1.442695, %v1152_v56  ;;  %v1153_v53 = vmul.f32 0.5, %v3878_v50  ;;  %1306 = vrot.lane.b32.xlu1 %v1263_v0, %s3346_s14 }
 0x251   : > { %3076 = vpow2.f32 %v1184_v36  ;;  %v1186_v45 = vmul.f32 1.442695, %v1155_v40 }
 0x252   : > { %3078 = vpow2.f32 %v1180_v44  ;;  %v1182_v7 = vmul.f32 1.442695, %v1153_v53  ;;  %1300 = vrot.lane.b32.xlu0 %v1260_v43, %s3346_s14 }
 0x253   : > { %3080 = vpow2.f32 %v1186_v45 }
 0x254   : > { %1302 = vrot.lane.b32.xlu1 %v1261_v4, %s3346_s14  ;;  %3082 = vpow2.f32 %v1182_v7 }
 0x256   : > { %3007 = vrot.lane.b32.xlu0 %v3006_v58, %s3347_s29 }
 0x258   : > { %3012 = vrot.lane.b32.xlu1 %v3011_v55, %s3347_s29 }
 0x25b   : > { %v3077_v62 = vpop.eup %3076 }
 0x25c   : > { %v3079_v49 = vpop.eup %3078  ;;  %v1266_v5 = vmul.f32 %v3077_v62, %v1233_v47 }
 0x25d   : > { %v3081_v6 = vpop.eup %3080  ;;  %v1264_v9 = vmul.f32 %v3079_v49, %v1229_v8 }
 0x25e   : > { %v1267_v22 = vmul.f32 %v3081_v6, %v1235_v1  ;;  %1312 = vrot.lane.b32.xlu0 %v1266_v5, %s3346_s14  ;;  %v3083_v23 = vpop.eup %3082 }
 0x25f   : > { %v1265_v26 = vmul.f32 %v3083_v23, %v1231_v60 }
 0x260   : > { %1314 = vrot.lane.b32.xlu1 %v1267_v22, %s3346_s14 }
 0x262   : > { %1308 = vrot.lane.b32.xlu0 %v1264_v9, %s3346_s14 }
 0x264   : > { %1310 = vrot.lane.b32.xlu1 %v1265_v26, %s3346_s14  ;;  %s3352_s14 = smov [#allocation5]  }
 0x266   : > { %3017 = vrot.lane.b32.xlu0 %v3016_v27, %s3347_s29 }
 0x268   : > { %3022 = vrot.lane.b32.xlu1 %v3021_v54, %s3347_s29  ;;  %s2583_s29 = sshll.u32 %s3537_s18, 7 }
 0x269   : > { %s4118_s23 = scalar_lea.vmem [#allocation5], %s2583_s29  ;;  %s3246_s29 = sshll.u32 %s3352_s14, 4  ;;  %s3247_s29 = int_to_ptr.vmem [resolvable:$false] %s3246_s29 }
 0x26a   : > { %s3248_s27 = scalar_lea.vmem %s3247_s29, 4096 }
 0x2a7   : > { %v1289_v11 = vpop.permute.xlu0 %1288 }
 0x2a8   : > { %v3915_v16 = vadd.f32 %v1289_v11, %v3798_v33 }
 0x2a9   : > { %v1291_v12 = vpop.permute.xlu1 %1290 }
 0x2aa   : > { %v3920_v21 = vadd.f32 %v1291_v12, %v3805_v37 }
 0x2ab   : > { %v1285_v15 = vpop.permute.xlu0 %1284 }
 0x2ac   : > { %v3907_v30 = vadd.f32 %v1285_v15, %v3801_v34 }
 0x2ad   : > { %v1287_v31 = vpop.permute.xlu1 %1286 }
 0x2ae   : > { %v3910_v38 = vadd.f32 %v1287_v31, %v3809_v42  ;;  %2011 = vrot.lane.b32.xlu0 %v3907_v30, %s3348_s19 }
 0x2af   : > { %v2988_v39 = vpop.permute.xlu0 %2987 }
 0x2b0   : > { %v2990_v19 = vunpack.i.h.bf16 %v2988_v39  ;;  %v2989_v20 = vunpack.i.l.bf16 %v2988_v39  ;;  %2013 = vrot.lane.b32.xlu1 %v3910_v38, %s3348_s19 }
 0x2b1   : > { %v2993_v57 = vpop.permute.xlu1 %2992 }
 0x2b2   : > { %v1398_v13 = vsel %vm1396_vm5, %v3910_v38, %v2990_v19  ;;  %v1397_v14 = vsel %vm1396_vm5, %v3907_v30, %v2989_v20  ;;  %v2995_v25 = vunpack.i.h.bf16 %v2993_v57  ;;  %v2994_v59 = vunpack.i.l.bf16 %v2993_v57  ;;  %2015 = vrot.lane.b32.xlu0 %v3915_v16, %s3348_s19 }
 0x2b3   : > { %v1413_v17 = vpack.c.bf16 %v1398_v13, %v1397_v14  ;;  %v1297_v18 = vpop.permute.xlu0 %1296 }
 0x2b4   : > { %v1400_v29 = vsel %vm1396_vm5, %v3920_v21, %v2995_v25  ;;  %v1399_v48 = vsel %vm1396_vm5, %v3915_v16, %v2994_v59  ;;  %2017 = vrot.lane.b32.xlu1 %v3920_v21, %s3348_s19  ;;  %v3946_v53 = vadd.f32 %v1297_v18, %v3815_v63 }
 0x2b5   : > { %v1414_v56 = vpack.c.bf16 %v1400_v29, %v1399_v48  ;;  %2862 = vmatprep.mubr.msk.bf16.mxu0 %vm1440_vm6, %v1413_v17  ;;  %v1299_v0 = vpop.permute.xlu1 %1298 }
 0x2b6   : > { %v3951_v7 = vadd.f32 %v1299_v0, %v3822_v52 }
 0x2b7   : > { %2863 = vmatmul.mubr.msk.bf16.vlgmr.msra.gmra.mrb[36].mxu0 %vm1440_vm6, %v1414_v56  ;;  %v1293_v35 = vpop.permute.xlu0 %1292 }
 0x2b8   : > { %v3937_v36 = vadd.f32 %v1293_v35, %v3818_v2  ;;  %2879 = vmatpush3.msk.msra.mxu0 %vm2076_vm4, %v1987_v51 }
 0x2b9   : > { %v1295_v40 = vpop.permute.xlu1 %1294 }
 0x2ba   : > { %v3941_v43 = vadd.f32 %v1295_v40, %v3826_v10  ;;  %2019 = vrot.lane.b32.xlu0 %v3937_v36, %s3348_s19 }
 0x2bb   : > { %v2998_v44 = vpop.permute.xlu0 %2997 }
 0x2bc   : > { %v3000_v45 = vunpack.i.h.bf16 %v2998_v44  ;;  %v2999_v4 = vunpack.i.l.bf16 %v2998_v44  ;;  %2021 = vrot.lane.b32.xlu1 %v3941_v43, %s3348_s19 }
 0x2bd   : > { %v3003_v58 = vpop.permute.xlu1 %3002 }
 0x2be   : > { %v1402_v8 = vsel %vm1396_vm5, %v3941_v43, %v3000_v45  ;;  %v1401_v55 = vsel %vm1396_vm5, %v3937_v36, %v2999_v4  ;;  %v3005_v60 = vunpack.i.h.bf16 %v3003_v58  ;;  %v3004_v47 = vunpack.i.l.bf16 %v3003_v58  ;;  %2023 = vrot.lane.b32.xlu0 %v3946_v53, %s3348_s19  ;;  %v3046_v4 = vld [vmem:[%s4384_s9] ss:$8 sps:$4 sm:$0xff]   ;;  %v3048_v58 = vld [vmem:[%s4384_s9 + $0x4] ss:$8 sps:$4 sm:$0xff]  }
 0x2bf   : > { %v1415_v62 = vpack.c.bf16 %v1402_v8, %v1401_v55  ;;  %1650 = vmatprep.subr.bf16.mxu1 %v3048_v58 }
 0x2c0   : > { %v1404_v1 = vsel %vm1396_vm5, %v3951_v7, %v3005_v60  ;;  %v1403_v49 = vsel %vm1396_vm5, %v3946_v53, %v3004_v47  ;;  %2025 = vrot.lane.b32.xlu1 %v3951_v7, %s3348_s19  ;;  %v1305_v6 = vpop.permute.xlu0 %1304  ;;  %1651 = vmatpush1.bf16.msra.mxu1 %v3046_v4 }
 0x2c1   : > { %v1416_v5 = vpack.c.bf16 %v1404_v1, %v1403_v49  ;;  %2866 = vmatprep.mubr.msk.bf16.mxu0 %vm1440_vm6, %v1415_v62  ;;  %v1342_v51 = vadd.f32 %v1305_v6, %v3840_v41 }
 0x2c2   : > { %v1307_v22 = vpop.permute.xlu1 %1306 }
 0x2c3   : > { %2867 = vmatmul.mubr.msk.bf16.gmra.mrb[40].mxu0 %vm1440_vm6, %v1416_v5  ;;  %v1343_v15 = vadd.f32 %v1307_v22, %v3848_v46 }
 0x2c4   : > { %v1301_v23 = vpop.permute.xlu0 %1300 }
 0x2c5   : > { %v1340_v9 = vadd.f32 %v1301_v23, %v3843_v3 }
 0x2c6   : > { %v1303_v26 = vpop.permute.xlu1 %1302 }
 0x2c7   : > { %v1341_v27 = vadd.f32 %v1303_v26, %v3852_v61  ;;  %2027 = vrot.lane.b32.xlu0 %v1340_v9, %s3348_s19 }
 0x2c8   : > { %v3008_v54 = vpop.permute.xlu0 %3007 }
 0x2c9   : > { %v3010_v11 = vunpack.i.h.bf16 %v3008_v54  ;;  %v3009_v12 = vunpack.i.l.bf16 %v3008_v54  ;;  %2029 = vrot.lane.b32.xlu1 %v1341_v27, %s3348_s19 }
 0x2ca   : > { %v3013_v31 = vpop.permute.xlu1 %3012 }
 0x2cb   : > { %v1406_v39 = vsel %vm1396_vm5, %v1341_v27, %v3010_v11  ;;  %v1405_v19 = vsel %vm1396_vm5, %v1340_v9, %v3009_v12  ;;  %v3015_v20 = vunpack.i.h.bf16 %v3013_v31  ;;  %v3014_v57 = vunpack.i.l.bf16 %v3013_v31  ;;  %2031 = vrot.lane.b32.xlu0 %v1342_v51, %s3348_s19 }
 0x2cc   : > { %v1417_v13 = vpack.c.bf16 %v1406_v39, %v1405_v19  ;;  %v2623_v19 = vld [vmem:[%s4383_s8] ss:$0 sm:$0xff] }
 0x2cd   : > { %v1408_v14 = vsel %vm1396_vm5, %v1343_v15, %v3015_v20  ;;  %v1407_v25 = vsel %vm1396_vm5, %v1342_v51, %v3014_v57  ;;  %2033 = vrot.lane.b32.xlu1 %v1343_v15, %s3348_s19 }
 0x2ce   : > { %v1418_v59 = vpack.c.bf16 %v1408_v14, %v1407_v25  ;;  %2870 = vmatprep.mubr.msk.bf16.mxu0 %vm1440_vm6, %v1417_v13 }
 0x2d0   : > { %v1313_v17 = vpop.permute.xlu0 %1312  ;;  %2871 = vmatmul.mubr.msk.bf16.gmra.mrb[44].mxu0 %vm1440_vm6, %v1418_v59 }
 0x2d1   : > { %v1346_v40 = vadd.f32 %v1313_v17, %v3867_v24 }
 0x2d2   : > { %v1315_v18 = vpop.permute.xlu1 %1314 }
 0x2d3   : > { %v1347_v8 = vadd.f32 %v1315_v18, %v3874_v32 }
 0x2d4   : > { %v1309_v29 = vpop.permute.xlu0 %1308 }
 0x2d5   : > { %v1344_v48 = vadd.f32 %v1309_v29, %v3870_v28 }
 0x2d6   : > { %v1311_v56 = vpop.permute.xlu1 %1310 }
 0x2d7   : > { %v1345_v0 = vadd.f32 %v1311_v56, %v3878_v50  ;;  %2035 = vrot.lane.b32.xlu0 %v1344_v48, %s3348_s19 }
 0x2d8   : > { %v3018_v35 = vpop.permute.xlu0 %3017 }
 0x2d9   : > { %v3020_v44 = vunpack.i.h.bf16 %v3018_v35  ;;  %v3019_v45 = vunpack.i.l.bf16 %v3018_v35  ;;  %2037 = vrot.lane.b32.xlu1 %v1345_v0, %s3348_s19 }
 0x2da   : > { %v3023_v55 = vpop.permute.xlu1 %3022 }
 0x2db   : > { %v1410_v60 = vsel %vm1396_vm5, %v1345_v0, %v3020_v44  ;;  %v1409_v47 = vsel %vm1396_vm5, %v1344_v48, %v3019_v45  ;;  %v3025_v62 = vunpack.i.h.bf16 %v3023_v55  ;;  %v3024_v1 = vunpack.i.l.bf16 %v3023_v55  ;;  %2039 = vrot.lane.b32.xlu0 %v1346_v40, %s3348_s19 }
 0x2dc   : > { %v1419_v49 = vpack.c.bf16 %v1410_v60, %v1409_v47 }
 0x2dd   : > { %v1412_v5 = vsel %vm1396_vm5, %v1347_v8, %v3025_v62  ;;  %v1411_v6 = vsel %vm1396_vm5, %v1346_v40, %v3024_v1  ;;  %2041 = vrot.lane.b32.xlu1 %v1347_v8, %s3348_s19  ;;  %s2440_s19 = sshll.u32 %s4118_s23, 4  ;;  %s4268_s19 = int_to_ptr.vmem [resolvable:$true] %s2440_s19 }
 0x2de   : > { %v1420_v22 = vpack.c.bf16 %v1412_v5, %v1411_v6  ;;  %2874 = vmatprep.mubr.msk.bf16.mxu0 %vm1440_vm6, %v1419_v49  ;;  %p3249_p10 = scmp.lt.s32.totalorder %s4268_s19, %s3247_s29 }
 0x2df   : > { %2225 = vrot.lane.b32.xlu0 %v3907_v30, %s3349_s28  ;;  %v3049_v30 = vld [vmem:[%s4384_s9 + $0x10] ss:$8 sps:$4 sm:$0xff]  }
 0x2e0   : > { %2875 = vmatmul.mubr.msk.bf16.gmra.mrb[48].mxu0 %vm1440_vm6, %v1420_v22 }
 0x2e1   : > { %2227 = vrot.lane.b32.xlu1 %v3910_v38, %s3349_s28  ;;  %v3051_v38 = vld [vmem:[%s4384_s9 + $0x14] ss:$8 sps:$4 sm:$0xff]  }
 0x2e2   : > { %1652 = vmatprep.subr.bf16.mxu1 %v3051_v38 }
 0x2e3   : > { %2229 = vrot.lane.b32.xlu0 %v3915_v16, %s3349_s28  ;;  %1653 = vmatpush1.bf16.msra.mxu1 %v3049_v30  ;;  %v3350_v16 = vmov 0  }
 0x2e4   : > { %1682 = vmatprep.mubr.bf16.mxu1 %v3350_v16 }
 0x2e5   : > { %2231 = vrot.lane.b32.xlu1 %v3920_v21, %s3349_s28 }
 0x2e7   : > { %2233 = vrot.lane.b32.xlu0 %v3937_v36, %s3349_s28 }
 0x2e9   : > { %2235 = vrot.lane.b32.xlu1 %v3941_v43, %s3349_s28 }
 0x2eb   : > { %2237 = vrot.lane.b32.xlu0 %v3946_v53, %s3349_s28 }
 0x2ed   : > { %2239 = vrot.lane.b32.xlu1 %v3951_v7, %s3349_s28 }
 0x2ef   : > { %2241 = vrot.lane.b32.xlu0 %v1340_v9, %s3349_s28 }
 0x2f1   : > { %2243 = vrot.lane.b32.xlu1 %v1341_v27, %s3349_s28 }
 0x2f3   : > { %2245 = vrot.lane.b32.xlu0 %v1342_v51, %s3349_s28 }
 0x2f5   : > { %2247 = vrot.lane.b32.xlu1 %v1343_v15, %s3349_s28 }
 0x2f7   : > { %2249 = vrot.lane.b32.xlu0 %v1344_v48, %s3349_s28 }
 0x2f9   : > { %2255 = vrot.lane.b32.xlu1 %v1347_v8, %s3349_s28 }
 0x2fb   : > { %2253 = vrot.lane.b32.xlu0 %v1346_v40, %s3349_s28 }
 0x2fd   : > { %2251 = vrot.lane.b32.xlu1 %v1345_v0, %s3349_s28  ;;  %s3242_s28 = scalar_lea.vmem %s4268_s19, 2048 }
 0x2fe   : > { %p3243_p6 = scmp.ne.s32.totalorder %s4268_s19, %s3242_s28  ;;  %p3250_p0 = scmp.lt.s32.totalorder %s3248_s27, %s3242_s28 }
 0x300   : > { %p3244_p13 = pnand %p3243_p6, %p4408_p12  ;;  %p3251_p2 = por %p3250_p0, %p3249_p10 }
 0x302   : > { %p3245_p8 = pneg %p3244_p13 }
 0x304   : > { %p3252_p4 = pnand %p3251_p2, %p3245_p8 }
 0x320   : > { %v2012_v21 = vpop.permute.xlu0 %2011 }
 0x321   : > { %2880 = vmatprep.mubr.msk.f32.mxu0 %vm2043_vm7, %v2012_v21 }
 0x322   : > { %v2014_v36 = vpop.permute.xlu1 %2013 }
 0x323   : > { %2881 = vmatmul.mubr.msk.f32.vlgmr.msra.gmra.mrb[52].mxu0 %vm2043_vm7, %v2014_v36 }
 0x324   : > { %v2016_v43 = vpop.permute.xlu0 %2015 }
 0x325   : > { %2883 = vmatprep.mubr.msk.f32.mxu0 %vm2043_vm7, %v2016_v43 }
 0x326   : > { %v2018_v53 = vpop.permute.xlu1 %2017 }
 0x327   : > { %2884 = vmatmul.mubr.msk.f32.gmra.mrb[54].mxu0 %vm2043_vm7, %v2018_v53 }
 0x32c   : > { %v2020_v7 = vpop.permute.xlu0 %2019 }
 0x32d   : > { %2886 = vmatprep.mubr.msk.f32.mxu0 %vm2043_vm7, %v2020_v7 }
 0x32e   : > { %v2022_v23 = vpop.permute.xlu1 %2021 }
 0x32f   : > { %2887 = vmatmul.mubr.msk.f32.gmra.mrb[56].mxu0 %vm2043_vm7, %v2022_v23 }
 0x330   : > { %v2024_v9 = vpop.permute.xlu0 %2023 }
 0x331   : > { %2889 = vmatprep.mubr.msk.f32.mxu0 %vm2043_vm7, %v2024_v9 }
 0x332   : > { %v2026_v26 = vpop.permute.xlu1 %2025 }
 0x333   : > { %2890 = vmatmul.mubr.msk.f32.gmra.mrb[58].mxu0 %vm2043_vm7, %v2026_v26 }
 0x339   : > { %v2028_v27 = vpop.permute.xlu0 %2027 }
 0x33a   : > { %2892 = vmatprep.mubr.msk.f32.mxu0 %vm2043_vm7, %v2028_v27 }
 0x33b   : > { %v2030_v54 = vpop.permute.xlu1 %2029 }
 0x33c   : > { %2893 = vmatmul.mubr.msk.f32.gmra.mrb[60].mxu0 %vm2043_vm7, %v2030_v54 }
 0x33d   : > { %v2032_v51 = vpop.permute.xlu0 %2031 }
 0x33e   : > { %2895 = vmatprep.mubr.msk.f32.mxu0 %vm2043_vm7, %v2032_v51 }
 0x33f   : > { %v2034_v11 = vpop.permute.xlu1 %2033 }
 0x340   : > { %2896 = vmatmul.mubr.msk.f32.gmra.mrb[62].mxu0 %vm2043_vm7, %v2034_v11 }
 0x349   : > { %v2036_v12 = vpop.permute.xlu0 %2035 }
 0x34a   : > { %2898 = vmatprep.mubr.msk.f32.mxu0 %vm2043_vm7, %v2036_v12 }
 0x34b   : > { %v2038_v15 = vpop.permute.xlu1 %2037 }
 0x34c   : > { %2899 = vmatmul.mubr.msk.f32.gmra.mrb[64].mxu0 %vm2043_vm7, %v2038_v15 }
 0x34d   : > { %v2040_v31 = vpop.permute.xlu0 %2039 }
 0x34e   : > { %2901 = vmatprep.mubr.msk.f32.mxu0 %vm2043_vm7, %v2040_v31 }
 0x34f   : > { %v2042_v39 = vpop.permute.xlu1 %2041 }
 0x350   : > { %2902 = vmatmul.mubr.msk.f32.gmra.mrb[66].mxu0 %vm2043_vm7, %v2042_v39 }
 0x38a   : > { %v2864_v20 = vpop.f32.mrb[36].mxu0 }
 0x38b   : > { %v1512_v57 = vadd.f32 %v2864_v20, %v2623_v19  ;;  %v1503_v13 = vpop.f32.mrb[37].mxu0 }
 0x38c   : > { %v1504_v14 = vadd.f32 %v2623_v19, %v1503_v13  ;;  %v2865_v25 = vpop.f32.mrb[38].mxu0 }
 0x38d   : > { %v1515_v59 = vadd.f32 %v2865_v25, %v2623_v19  ;;  %v1506_v17 = vpop.f32.mrb[39].mxu0  ;;  %v1568_v29 = vmax.f32 %v1512_v57, 0.0 }
 0x38e   : > { %v1507_v18 = vadd.f32 %v2623_v19, %v1506_v17  ;;  %v1566_v56 = vmax.f32 %v1504_v14, 0.0 }
 0x38f   : > { %v1569_v48 = vmax.f32 %v1515_v59, 0.0 }
 0x390   : > { %v1567_v0 = vmax.f32 %v1507_v18, 0.0 }
 0x391   : > { %v1583_v35 = vpack.c.bf16 %v1569_v48, %v1568_v29 }
 0x392   : > { %v1582_v40 = vpack.c.bf16 %v1567_v0, %v1566_v56 }
 0x394   : > { %2638 = vmatmul.mubr.msk.bf16.vlgmr.msra.gmra.mrb[28].mxu1 %vm1018_vm2, %v1582_v40 }
 0x395   : > { %1692 = vmatprep.mubr.bf16.mxu1 %v3350_v16 }
 0x396   : > { %v2868_v44 = vpop.f32.mrb[40].mxu0 }
 0x397   : > { %v1528_v45 = vadd.f32 %v2868_v44, %v2623_v19  ;;  %v1519_v4 = vpop.f32.mrb[41].mxu0 }
 0x398   : > { %v1520_v58 = vadd.f32 %v2623_v19, %v1519_v4  ;;  %v2869_v8 = vpop.f32.mrb[42].mxu0 }
 0x399   : > { %v1531_v55 = vadd.f32 %v2869_v8, %v2623_v19  ;;  %v1522_v60 = vpop.f32.mrb[43].mxu0  ;;  %v1572_v62 = vmax.f32 %v1528_v45, 0.0 }
 0x39a   : > { %v1523_v47 = vadd.f32 %v2623_v19, %v1522_v60  ;;  %v1570_v49 = vmax.f32 %v1520_v58, 0.0 }
 0x39b   : > { %v1573_v1 = vmax.f32 %v1531_v55, 0.0 }
 0x39c   : > { %v1571_v5 = vmax.f32 %v1523_v47, 0.0  ;;  %2639 = vmatmul.mubr.msk.bf16.gmra.mrb[32].mxu1 %vm1018_vm2, %v1583_v35 }
 0x39d   : > { %v1585_v6 = vpack.c.bf16 %v1573_v1, %v1572_v62  ;;  %1702 = vmatprep.mubr.bf16.mxu1 %v3350_v16 }
 0x39e   : > { %v1584_v22 = vpack.c.bf16 %v1571_v5, %v1570_v49 }
 0x3a3   : > { %v2872_v30 = vpop.f32.mrb[44].mxu0 }
 0x3a4   : > { %2640 = vmatmul.mubr.msk.bf16.gmra.mrb[36].mxu1 %vm1018_vm2, %v1584_v22  ;;  %v1544_v38 = vadd.f32 %v2872_v30, %v2623_v19  ;;  %v1535_v21 = vpop.f32.mrb[45].mxu0 }
 0x3a5   : > { %1712 = vmatprep.mubr.bf16.mxu1 %v3350_v16  ;;  %v1536_v36 = vadd.f32 %v2623_v19, %v1535_v21  ;;  %v2873_v43 = vpop.f32.mrb[46].mxu0 }
 0x3a6   : > { %v1547_v53 = vadd.f32 %v2873_v43, %v2623_v19  ;;  %v1538_v7 = vpop.f32.mrb[47].mxu0  ;;  %v1576_v9 = vmax.f32 %v1544_v38, 0.0 }
 0x3a7   : > { %v1539_v23 = vadd.f32 %v2623_v19, %v1538_v7  ;;  %v1574_v27 = vmax.f32 %v1536_v36, 0.0 }
 0x3a8   : > { %v1577_v26 = vmax.f32 %v1547_v53, 0.0 }
 0x3a9   : > { %v1575_v54 = vmax.f32 %v1539_v23, 0.0 }
 0x3aa   : > { %v1587_v51 = vpack.c.bf16 %v1577_v26, %v1576_v9 }
 0x3ab   : > { %v1586_v11 = vpack.c.bf16 %v1575_v54, %v1574_v27 }
 0x3ac   : > { %2641 = vmatmul.mubr.msk.bf16.gmra.mrb[40].mxu1 %vm1018_vm2, %v1585_v6 }
 0x3ad   : > { %1722 = vmatprep.mubr.bf16.mxu1 %v3350_v16 }
 0x3b3   : > { %v2876_v12 = vpop.f32.mrb[48].mxu0 }
 0x3b4   : > { %2642 = vmatmul.mubr.msk.bf16.gmra.mrb[44].mxu1 %vm1018_vm2, %v1586_v11  ;;  %v1560_v15 = vadd.f32 %v2876_v12, %v2623_v19  ;;  %v1551_v31 = vpop.f32.mrb[49].mxu0  ;;  %v2228_v11 = vpop.permute.xlu1 %2227 }
 0x3b5   : > { %1732 = vmatprep.mubr.bf16.mxu1 %v3350_v16  ;;  %v1552_v39 = vadd.f32 %v2623_v19, %v1551_v31  ;;  %v2877_v20 = vpop.f32.mrb[50].mxu0  ;;  %v2226_v12 = vpop.permute.xlu0 %2225 }
 0x3b6   : > { %v1563_v57 = vadd.f32 %v2877_v20, %v2623_v19  ;;  %v1554_v13 = vpop.f32.mrb[51].mxu0  ;;  %v1580_v25 = vmax.f32 %v1560_v15, 0.0 }
 0x3b7   : > { %v1555_v14 = vadd.f32 %v2623_v19, %v1554_v13  ;;  %v1578_v17 = vmax.f32 %v1552_v39, 0.0  ;;  %v2678_v19 = vld [vmem:[%s4387_s12] ss:$0 sm:$0xff] }
 0x3b8   : > { %v1581_v59 = vmax.f32 %v1563_v57, 0.0  ;;  %v2232_v15 = vpop.permute.xlu1 %2231 }
 0x3b9   : > { %v1579_v18 = vmax.f32 %v1555_v14, 0.0  ;;  %v2230_v31 = vpop.permute.xlu0 %2229 }
 0x3ba   : > { %v1589_v29 = vpack.c.bf16 %v1581_v59, %v1580_v25  ;;  %v1596_v59 = vlaneseq }
 0x3bb   : > { %v1588_v48 = vpack.c.bf16 %v1579_v18, %v1578_v17 }
 0x3bc   : > { %2643 = vmatmul.mubr.msk.bf16.gmra.mrb[48].mxu1 %vm1018_vm2, %v1587_v51  ;;  %v4069_v39 = vpop.permute.xlu1 %2235 }
 0x3bd   : > { %1742 = vmatprep.mubr.bf16.mxu1 %v3350_v16  ;;  %v4071_v20 = vpop.permute.xlu0 %2233 }
 0x3c0   : > { %v4073_v57 = vpop.permute.xlu1 %2239 }
 0x3c1   : > { %v4075_v13 = vpop.permute.xlu0 %2237 }
 0x3c4   : > { %2644 = vmatmul.mubr.msk.bf16.gmra.mrb[52].mxu1 %vm1018_vm2, %v1588_v48  ;;  %v4077_v14 = vpop.permute.xlu1 %2243 }
 0x3c5   : > { %1752 = vmatprep.mubr.bf16.mxu1 %v3350_v16  ;;  %v4079_v25 = vpop.permute.xlu0 %2241 }
 0x3c8   : > { %v4081_v17 = vpop.permute.xlu1 %2247 }
 0x3c9   : > { %v4083_v18 = vpop.permute.xlu0 %2245 }
 0x3cc   : > { %2645 = vmatmul.mubr.msk.bf16.gmra.mrb[56].mxu1 %vm1018_vm2, %v1589_v29  ;;  %v1597_v29 = vshrl.u32 %v1596_v59, 7 }
 0x3ce   : > { %v1598_v48 = vsub.s32 0, %v1597_v29 }
 0x3f6   : > { %v2882_v56 = vpop.f32.mrb[52].mxu0 }
 0x3f7   : > { %v2152_v0 = vadd.f32 %v2882_v56, %v2678_v19  ;;  %v2146_v35 = vpop.f32.mrb[53].mxu0  ;;  %v1594_v56 = vld [vmem:[%s4385_s10] sm:$0x3] }
 0x3f8   : > { %v2147_v40 = vadd.f32 %v2678_v19, %v2146_v35  ;;  %v4090_v35 = vpop.permute.xlu0 %2249 }
 0x3f9   : > { %2291 = vrot.lane.b32.xlu1 %v2152_v0, %s3351_s24  ;;  %v1602_v0 = vsub.s32 1, %v1597_v29 }
 0x3fa   : > { %v2885_v44 = vpop.f32.mrb[54].mxu0  ;;  %2289 = vrot.lane.b32.xlu0 %v2147_v40, %s3351_s24  ;;  %v4092_v40 = vrot.slane %v1594_v56, %v1598_v48 }
 0x3fb   : > { %v2162_v45 = vadd.f32 %v2885_v44, %v2678_v19  ;;  %v2156_v4 = vpop.f32.mrb[55].mxu0  ;;  %v4094_v44 = vrot.slane %v1594_v56, %v1602_v0 }
 0x3fc   : > { %v2157_v58 = vadd.f32 %v2678_v19, %v2156_v4 }
 0x3fd   : > { %2295 = vrot.lane.b32.xlu1 %v2162_v45, %s3351_s24  ;;  %v2338_v45 = vsel %vm2337_vm8, %v3801_v34, %v2226_v12 }
 0x3fe   : > { %2293 = vrot.lane.b32.xlu0 %v2157_v58, %s3351_s24 }
 0x402   : > { %v2888_v16 = vpop.f32.mrb[56].mxu0 }
 0x403   : > { %v2172_v8 = vadd.f32 %v2888_v16, %v2678_v19  ;;  %v2166_v55 = vpop.f32.mrb[57].mxu0  ;;  %v2339_v16 = vsel %vm2337_vm8, %v3809_v42, %v2228_v11  ;;  %v2340_v42 = vsel %vm2337_vm8, %v3798_v33, %v2230_v31 }
 0x404   : > { %v2167_v60 = vadd.f32 %v2678_v19, %v2166_v55 }
 0x405   : > { %2299 = vrot.lane.b32.xlu1 %v2172_v8, %s3351_s24  ;;  %v4102_v8 = vpop.permute.xlu0 %2253 }
 0x406   : > { %v2891_v47 = vpop.f32.mrb[58].mxu0  ;;  %2297 = vrot.lane.b32.xlu0 %v2167_v60, %s3351_s24 }
 0x407   : > { %v2182_v62 = vadd.f32 %v2891_v47, %v2678_v19  ;;  %v2176_v1 = vpop.f32.mrb[59].mxu0 }
 0x408   : > { %v2177_v49 = vadd.f32 %v2678_v19, %v2176_v1  ;;  %v2355_v1 = vsel %vm2354_vm9, %v2338_v45, %v2226_v12 }
 0x409   : > { %2303 = vrot.lane.b32.xlu1 %v2182_v62, %s3351_s24 }
 0x40a   : > { %2301 = vrot.lane.b32.xlu0 %v2177_v49, %s3351_s24 }
 0x40f   : > { %v2894_v5 = vpop.f32.mrb[60].mxu0 }
 0x410   : > { %v2192_v6 = vadd.f32 %v2894_v5, %v2678_v19  ;;  %v2186_v22 = vpop.f32.mrb[61].mxu0 }
 0x411   : > { %v2187_v30 = vadd.f32 %v2678_v19, %v2186_v22 }
 0x412   : > { %2307 = vrot.lane.b32.xlu1 %v2192_v6, %s3351_s24  ;;  %v2356_v6 = vsel %vm2354_vm9, %v2339_v16, %v2228_v11  ;;  %v2342_v16 = vsel %vm2337_vm8, %v3818_v2, %v4071_v20 }
 0x413   : > { %v2897_v38 = vpop.f32.mrb[62].mxu0  ;;  %2305 = vrot.lane.b32.xlu0 %v2187_v30, %s3351_s24  ;;  %v2359_v2 = vsel %vm2354_vm9, %v2342_v16, %v4071_v20 }
 0x414   : > { %v2202_v21 = vadd.f32 %v2897_v38, %v2678_v19  ;;  %v2196_v36 = vpop.f32.mrb[63].mxu0 }
 0x415   : > { %v2197_v43 = vadd.f32 %v2678_v19, %v2196_v36 }
 0x416   : > { %2311 = vrot.lane.b32.xlu1 %v2202_v21, %s3351_s24  ;;  %v2341_v21 = vsel %vm2337_vm8, %v3805_v37, %v2232_v15 }
 0x417   : > { %2309 = vrot.lane.b32.xlu0 %v2197_v43, %s3351_s24  ;;  %v2358_v37 = vsel %vm2354_vm9, %v2341_v21, %v2232_v15 }
 0x41f   : > { %v2900_v53 = vpop.f32.mrb[64].mxu0 }
 0x420   : > { %v2212_v7 = vadd.f32 %v2900_v53, %v2678_v19  ;;  %v2206_v23 = vpop.f32.mrb[65].mxu0 }
 0x421   : > { %v2207_v9 = vadd.f32 %v2678_v19, %v2206_v23 }
 0x422   : > { %2315 = vrot.lane.b32.xlu1 %v2212_v7, %s3351_s24 }
 0x423   : > { %v2903_v26 = vpop.f32.mrb[66].mxu0  ;;  %2313 = vrot.lane.b32.xlu0 %v2207_v9, %s3351_s24 }
 0x424   : > { %v2222_v27 = vadd.f32 %v2903_v26, %v2678_v19  ;;  %v2216_v54 = vpop.f32.mrb[67].mxu0 }
 0x425   : > { %v2217_v51 = vadd.f32 %v2678_v19, %v2216_v54  ;;  %v4085_v19 = vpop.permute.xlu1 %2255  ;;  %v2357_v54 = vsel %vm2354_vm9, %v2340_v42, %v2230_v31 }
 0x426   : > { %2319 = vrot.lane.b32.xlu1 %v2222_v27, %s3351_s24 }
 0x427   : > { %2317 = vrot.lane.b32.xlu0 %v2217_v51, %s3351_s24 }
 0x429   : > { %v4098_v4 = vpop.permute.xlu1 %2251 }
 0x467   : > { %v1684_v58 = vpop.f32.mrb[28].mxu1 }
 0x468   : > { %v1685_v55 = vadd.f32 %v1684_v58, %v4092_v40  ;;  %v1686_v60 = vpop.f32.mrb[29].mxu1 }
 0x469   : > { %v1687_v47 = vadd.f32 %v1686_v60, %v4094_v44  ;;  %v1688_v62 = vpop.f32.mrb[30].mxu1 }
 0x46a   : > { %v2646_v49 = vmul.f32 -1.442695, %v1685_v55  ;;  %v1689_v34 = vadd.f32 %v1688_v62, %v4092_v40  ;;  %v1690_v5 = vpop.f32.mrb[31].mxu1 }
 0x46b   : > { %v2647_v22 = vmul.f32 -1.442695, %v1687_v47  ;;  %v1691_v30 = vadd.f32 %v1690_v5, %v4094_v44  ;;  %v2292_v38 = vpop.permute.xlu1 %2291  ;;  %v2343_v47 = vsel %vm2337_vm8, %v3826_v10, %v4069_v39  ;;  %v2344_v10 = vsel %vm2337_vm8, %v3815_v63, %v4075_v13 }
 0x46c   : > { %3084 = vpow2.f32 %v2646_v49  ;;  %v2648_v36 = vmul.f32 -1.442695, %v1689_v34  ;;  %v2373_v43 = vsel %vm2371_vm10, %v2356_v6, %v2292_v38  ;;  %v2290_v53 = vpop.permute.xlu0 %2289  ;;  %v2360_v6 = vsel %vm2354_vm9, %v2343_v47, %v4069_v39 }
 0x46d   : > { %3086 = vpow2.f32 %v2647_v22  ;;  %v2649_v7 = vmul.f32 -1.442695, %v1691_v30  ;;  %v2390_v23 = vsel %vm2388_vm11, %v2373_v43, 0.0  ;;  %v2372_v9 = vsel %vm2371_vm10, %v2355_v1, %v2290_v53 }
 0x46e   : > { %3088 = vpow2.f32 %v2648_v36  ;;  %2406 = vst [vmem:[%s4118_s23 + $0x8] sm:$0xff] %v2390_v23  ;;  %v2389_v33 = vsel %vm2388_vm11, %v2372_v9, 0.0  ;;  %v2345_v1 = vsel %vm2337_vm8, %v3822_v52, %v4073_v57 }
 0x46f   : > { %3090 = vpow2.f32 %v2649_v7  ;;  %2405 = vst [vmem:[%s4118_s23] sm:$0xff] %v2389_v33  ;;  %v2296_v26 = vpop.permute.xlu1 %2295  ;;  %v1694_v27 = vpop.f32.mrb[32].mxu1  ;;  %v2362_v38 = vsel %vm2354_vm9, %v2345_v1, %v4073_v57 }
 0x470   : > { %v2375_v51 = vsel %vm2371_vm10, %v2358_v37, %v2296_v26  ;;  %v1695_v11 = vadd.f32 %v1694_v27, %v4092_v40  ;;  %v2294_v12 = vpop.permute.xlu0 %2293  ;;  %v1696_v59 = vpop.f32.mrb[33].mxu1 }
 0x471   : > { %v2392_v29 = vsel %vm2388_vm11, %v2375_v51, 0.0  ;;  %v2374_v48 = vsel %vm2371_vm10, %v2357_v54, %v2294_v12  ;;  %v1697_v56 = vadd.f32 %v1696_v59, %v4094_v44  ;;  %v1698_v15 = vpop.f32.mrb[34].mxu1  ;;  %v2361_v12 = vsel %vm2354_vm9, %v2344_v10, %v4075_v13 }
 0x472   : > { %2408 = vst [vmem:[%s4118_s23 + $0x18] sm:$0xff] %v2392_v29  ;;  %v2650_v0 = vmul.f32 -1.442695, %v1695_v11  ;;  %v2391_v45 = vsel %vm2388_vm11, %v2374_v48, 0.0  ;;  %v1699_v58 = vadd.f32 %v1698_v15, %v4092_v40  ;;  %v1700_v31 = vpop.f32.mrb[35].mxu1 }
 0x473   : > { %2407 = vst [vmem:[%s4118_s23 + $0x10] sm:$0xff] %v2391_v45  ;;  %v2651_v55 = vmul.f32 -1.442695, %v1697_v56  ;;  %v1701_v60 = vadd.f32 %v1700_v31, %v4094_v44 }
 0x474   : > { %3092 = vpow2.f32 %v2650_v0  ;;  %v2652_v62 = vmul.f32 -1.442695, %v1699_v58 }
 0x475   : > { %3094 = vpow2.f32 %v2651_v55  ;;  %v2653_v49 = vmul.f32 -1.442695, %v1701_v60 }
 0x476   : > { %v3085_v34 = vpop.eup %3084  ;;  %3096 = vpow2.f32 %v2652_v62 }
 0x477   : > { %v3087_v5 = vpop.eup %3086  ;;  %v1859_v42 = vadd.f32 1.0, %v3085_v34  ;;  %3098 = vpow2.f32 %v2653_v49  ;;  %v1704_v22 = vpop.f32.mrb[36].mxu1 }
 0x478   : > { %v2300_v30 = vpop.permute.xlu1 %2299  ;;  %v3089_v52 = vpop.eup %3088  ;;  %v1860_v21 = vadd.f32 1.0, %v3087_v5  ;;  %v1705_v20 = vadd.f32 %v1704_v22, %v4092_v40 }
 0x479   : > { %v2377_v36 = vsel %vm2371_vm10, %v2360_v6, %v2300_v30  ;;  %v1706_v43 = vpop.f32.mrb[37].mxu1  ;;  %v2298_v39 = vpop.permute.xlu0 %2297  ;;  %3100 = vrcp.f32 %v1859_v42  ;;  %v1861_v7 = vadd.f32 1.0, %v3089_v52  ;;  %v2346_v52 = vsel %vm2337_vm8, %v3843_v3, %v4079_v25 }
 0x47a   : > { %v3091_v53 = vpop.eup %3090  ;;  %v2394_v63 = vsel %vm2388_vm11, %v2377_v36, 0.0  ;;  %v1707_v23 = vadd.f32 %v1706_v43, %v4094_v44  ;;  %v1708_v9 = vpop.f32.mrb[38].mxu1  ;;  %3102 = vrcp.f32 %v1860_v21  ;;  %v2654_v37 = vmul.f32 -1.442695, %v1705_v20 }
 0x47b   : > { %v1862_v33 = vadd.f32 1.0, %v3091_v53  ;;  %2410 = vst [vmem:[%s4118_s23 + $0x28] sm:$0xff] %v2394_v63  ;;  %v2376_v57 = vsel %vm2371_vm10, %v2359_v2, %v2298_v39  ;;  %v1710_v26 = vpop.f32.mrb[39].mxu1  ;;  %3104 = vrcp.f32 %v1861_v7  ;;  %v1709_v51 = vadd.f32 %v1708_v9, %v4092_v40 }
 0x47c   : > { %v2655_v27 = vmul.f32 -1.442695, %v1707_v23  ;;  %v2393_v54 = vsel %vm2388_vm11, %v2376_v57, 0.0  ;;  %v2304_v11 = vpop.permute.xlu1 %2303  ;;  %v1711_v59 = vadd.f32 %v1710_v26, %v4094_v44  ;;  %v2347_v36 = vsel %vm2337_vm8, %v3852_v61, %v4077_v14 }
 0x47d   : > { %3106 = vrcp.f32 %v1862_v33  ;;  %2409 = vst [vmem:[%s4118_s23 + $0x20] sm:$0xff] %v2393_v54  ;;  %v2379_v29 = vsel %vm2371_vm10, %v2362_v38, %v2304_v11  ;;  %v2302_v48 = vpop.permute.xlu0 %2301  ;;  %v2656_v56 = vmul.f32 -1.442695, %v1709_v51  ;;  %v2349_v43 = vsel %vm2337_vm8, %v3848_v46, %v4081_v17 }
 0x47e   : > { %3108 = vpow2.f32 %v2654_v37  ;;  %v2396_v15 = vsel %vm2388_vm11, %v2379_v29, 0.0  ;;  %v2378_v0 = vsel %vm2371_vm10, %v2361_v12, %v2302_v48  ;;  %v3093_v45 = vpop.eup %3092  ;;  %v2657_v58 = vmul.f32 -1.442695, %v1711_v59 }
 0x47f   : > { %3110 = vpow2.f32 %v2655_v27  ;;  %2412 = vst [vmem:[%s4118_s23 + $0x38] sm:$0xff] %v2396_v15  ;;  %v2395_v13 = vsel %vm2388_vm11, %v2378_v0, 0.0  ;;  %v3095_v31 = vpop.eup %3094  ;;  %v1863_v16 = vadd.f32 1.0, %v3093_v45  ;;  %v1714_v55 = vpop.f32.mrb[40].mxu1  ;;  %v2363_v61 = vsel %vm2354_vm9, %v2346_v52, %v4079_v25 }
 0x480   : > { %3112 = vpow2.f32 %v2656_v56  ;;  %2411 = vst [vmem:[%s4118_s23 + $0x30] sm:$0xff] %v2395_v13  ;;  %v3097_v60 = vpop.eup %3096  ;;  %v1864_v47 = vadd.f32 1.0, %v3095_v31  ;;  %v1715_v62 = vadd.f32 %v1714_v55, %v4092_v40  ;;  %v1716_v1 = vpop.f32.mrb[41].mxu1  ;;  %v2364_v63 = vsel %vm2354_vm9, %v2347_v36, %v4077_v14 }
 0x481   : > { %3114 = vpow2.f32 %v2657_v58  ;;  %v3099_v49 = vpop.eup %3098  ;;  %v1865_v34 = vadd.f32 1.0, %v3097_v60  ;;  %v1717_v2 = vadd.f32 %v1716_v1, %v4094_v44  ;;  %v1718_v5 = vpop.f32.mrb[42].mxu1  ;;  %v2348_v23 = vsel %vm2337_vm8, %v3840_v41, %v4083_v18 }
 0x482   : > { %3116 = vrcp.f32 %v1863_v16  ;;  %v1866_v6 = vadd.f32 1.0, %v3099_v49  ;;  %v2658_v10 = vmul.f32 -1.442695, %v1715_v62  ;;  %v1719_v42 = vadd.f32 %v1718_v5, %v4092_v40  ;;  %v1720_v22 = vpop.f32.mrb[43].mxu1 }
 0x483   : > { %3118 = vrcp.f32 %v1864_v47  ;;  %v3101_v30 = vpop.eup %3100  ;;  %v2659_v38 = vmul.f32 -1.442695, %v1717_v2  ;;  %v1721_v21 = vadd.f32 %v1720_v22, %v4094_v44  ;;  %v2366_v9 = vsel %vm2354_vm9, %v2349_v43, %v4081_v17 }
 0x484   : > { %3120 = vrcp.f32 %v1865_v34  ;;  %v3103_v20 = vpop.eup %3102  ;;  %1955 = vst [vmem:[%s4186_s15] sm:$0xff] %v3101_v30  ;;  %v2660_v3 = vmul.f32 -1.442695, %v1719_v42  ;;  %v2308_v37 = vpop.permute.xlu1 %2307  ;;  %v2365_v60 = vsel %vm2354_vm9, %v2348_v23, %v4083_v18 }
 0x485   : > { %3122 = vrcp.f32 %v1866_v6  ;;  %v3105_v39 = vpop.eup %3104  ;;  %1956 = vst [vmem:[%s4186_s15 + $0x8] sm:$0xff] %v3103_v20  ;;  %v2661_v53 = vmul.f32 -1.442695, %v1721_v21  ;;  %v2381_v27 = vsel %vm2371_vm10, %v2364_v63, %v2308_v37  ;;  %v2306_v54 = vpop.permute.xlu0 %2305  ;;  %v2350_v37 = vsel %vm2337_vm8, %v3870_v28, %v4090_v35 }
 0x486   : > { %3124 = vpow2.f32 %v2658_v10  ;;  %1957 = vst [vmem:[%s4186_s15 + $0x10] sm:$0xff] %v3105_v39  ;;  %v2398_v41 = vsel %vm2388_vm11, %v2381_v27, 0.0  ;;  %v2380_v12 = vsel %vm2371_vm10, %v2363_v61, %v2306_v54  ;;  %v2353_v27 = vsel %vm2337_vm8, %v3874_v32, %v4085_v19 }
 0x487   : > { %v3107_v7 = vpop.eup %3106  ;;  %3126 = vpow2.f32 %v2659_v38  ;;  %v1724_v33 = vpop.f32.mrb[44].mxu1  ;;  %2414 = vst [vmem:[%s4118_s23 + $0x48] sm:$0xff] %v2398_v41  ;;  %v2397_v15 = vsel %vm2388_vm11, %v2380_v12, 0.0  ;;  %v2370_v12 = vsel %vm2354_vm9, %v2353_v27, %v4085_v19 }
 0x488   : > { %v3109_v46 = vpop.eup %3108  ;;  %1958 = vst [vmem:[%s4186_s15 + $0x18] sm:$0xff] %v3107_v7  ;;  %3128 = vpow2.f32 %v2660_v3  ;;  %v1725_v25 = vadd.f32 %v1724_v33, %v4092_v40  ;;  %v1726_v14 = vpop.f32.mrb[45].mxu1  ;;  %2413 = vst [vmem:[%s4118_s23 + $0x40] sm:$0xff] %v2397_v15 }
 0x489   : > { %v3111_v57 = vpop.eup %3110  ;;  %v1867_v26 = vadd.f32 1.0, %v3109_v46  ;;  %3130 = vpow2.f32 %v2661_v53  ;;  %v1727_v17 = vadd.f32 %v1726_v14, %v4094_v44  ;;  %v1728_v59 = vpop.f32.mrb[46].mxu1 }
 0x48a   : > { %v3113_v51 = vpop.eup %3112  ;;  %v1868_v11 = vadd.f32 1.0, %v3111_v57  ;;  %v2662_v56 = vmul.f32 -1.442695, %v1725_v25  ;;  %v1730_v0 = vpop.f32.mrb[47].mxu1  ;;  %v1729_v31 = vadd.f32 %v1728_v59, %v4092_v40  ;;  %v2351_v57 = vsel %vm2337_vm8, %v3878_v50, %v4098_v4 }
 0x48b   : > { %v3115_v29 = vpop.eup %3114  ;;  %3132 = vrcp.f32 %v1867_v26  ;;  %v1869_v48 = vadd.f32 1.0, %v3113_v51  ;;  %v2663_v13 = vmul.f32 -1.442695, %v1727_v17  ;;  %v2312_v16 = vpop.permute.xlu1 %2311  ;;  %v1731_v47 = vadd.f32 %v1730_v0, %v4094_v44 }
 0x48c   : > { %v3117_v45 = vpop.eup %3116  ;;  %3134 = vrcp.f32 %v1868_v11  ;;  %v1870_v58 = vadd.f32 1.0, %v3115_v29  ;;  %v2383_v62 = vsel %vm2371_vm10, %v2366_v9, %v2312_v16  ;;  %v2310_v1 = vpop.permute.xlu0 %2309  ;;  %v2664_v34 = vmul.f32 -1.442695, %v1729_v31 }
 0x48d   : > { %v3119_v55 = vpop.eup %3118  ;;  %1959 = vst [vmem:[%s4186_s15 + $0x20] sm:$0xff] %v3117_v45  ;;  %3136 = vrcp.f32 %v1869_v48  ;;  %v2400_v2 = vsel %vm2388_vm11, %v2383_v62, 0.0  ;;  %v2382_v5 = vsel %vm2371_vm10, %v2365_v60, %v2310_v1  ;;  %v2665_v18 = vmul.f32 -1.442695, %v1731_v47 }
 0x48e   : > { %v3121_v49 = vpop.eup %3120  ;;  %1960 = vst [vmem:[%s4186_s15 + $0x28] sm:$0xff] %v3119_v55  ;;  %3138 = vrcp.f32 %v1870_v58  ;;  %2416 = vst [vmem:[%s4118_s23 + $0x58] sm:$0xff] %v2400_v2  ;;  %v2399_v10 = vsel %vm2388_vm11, %v2382_v5, 0.0  ;;  %v2367_v51 = vsel %vm2354_vm9, %v2350_v37, %v4090_v35  ;;  %v2352_v50 = vsel %vm2337_vm8, %v3867_v24, %v4102_v8 }
 0x48f   : > { %v3123_v6 = vpop.eup %3122  ;;  %1961 = vst [vmem:[%s4186_s15 + $0x30] sm:$0xff] %v3121_v49  ;;  %3140 = vpow2.f32 %v2662_v56  ;;  %2415 = vst [vmem:[%s4118_s23 + $0x50] sm:$0xff] %v2399_v10  ;;  %v1734_v22 = vpop.f32.mrb[48].mxu1  ;;  %v2368_v11 = vsel %vm2354_vm9, %v2351_v57, %v4098_v4  ;;  %v2369_v45 = vsel %vm2354_vm9, %v2352_v50, %v4102_v8 }
 0x490   : > { %v3125_v42 = vpop.eup %3124  ;;  %1962 = vst [vmem:[%s4186_s15 + $0x38] sm:$0xff] %v3123_v6  ;;  %3142 = vpow2.f32 %v2663_v13  ;;  %v1735_v38 = vadd.f32 %v1734_v22, %v4092_v40  ;;  %v1736_v21 = vpop.f32.mrb[49].mxu1 }
 0x491   : > { %v3127_v30 = vpop.eup %3126  ;;  %v1871_v52 = vadd.f32 1.0, %v3125_v42  ;;  %3144 = vpow2.f32 %v2664_v34  ;;  %v1737_v43 = vadd.f32 %v1736_v21, %v4094_v44  ;;  %v1738_v3 = vpop.f32.mrb[50].mxu1 }
 0x492   : > { %v3129_v20 = vpop.eup %3128  ;;  %v1872_v36 = vadd.f32 1.0, %v3127_v30  ;;  %3146 = vpow2.f32 %v2665_v18  ;;  %v2666_v7 = vmul.f32 -1.442695, %v1735_v38  ;;  %v1739_v61 = vadd.f32 %v1738_v3, %v4092_v40  ;;  %v1740_v46 = vpop.f32.mrb[51].mxu1 }
 0x493   : > { %v3131_v39 = vpop.eup %3130  ;;  %3148 = vrcp.f32 %v1871_v52  ;;  %v1873_v53 = vadd.f32 1.0, %v3129_v20  ;;  %v2667_v23 = vmul.f32 -1.442695, %v1737_v43  ;;  %v1741_v9 = vadd.f32 %v1740_v46, %v4094_v44 }
 0x494   : > { %3150 = vrcp.f32 %v1872_v36  ;;  %v1874_v63 = vadd.f32 1.0, %v3131_v39  ;;  %v2668_v26 = vmul.f32 -1.442695, %v1739_v61  ;;  %v2316_v41 = vpop.permute.xlu1 %2315 }
 0x495   : > { %v3133_v33 = vpop.eup %3132  ;;  %3152 = vrcp.f32 %v1873_v53  ;;  %v2669_v14 = vmul.f32 -1.442695, %v1741_v9  ;;  %v2385_v24 = vsel %vm2371_vm10, %v2368_v11, %v2316_v41  ;;  %v2314_v29 = vpop.permute.xlu0 %2313 }
 0x496   : > { %v3135_v25 = vpop.eup %3134  ;;  %1963 = vst [vmem:[%s4186_s15 + $0x40] sm:$0xff] %v3133_v33  ;;  %3154 = vrcp.f32 %v1874_v63  ;;  %v2402_v56 = vsel %vm2388_vm11, %v2385_v24, 0.0  ;;  %v2384_v13 = vsel %vm2371_vm10, %v2367_v51, %v2314_v29 }
 0x497   : > { %v3137_v54 = vpop.eup %3136  ;;  %1964 = vst [vmem:[%s4186_s15 + $0x48] sm:$0xff] %v3135_v25  ;;  %3156 = vpow2.f32 %v2666_v7  ;;  %v1744_v32 = vpop.f32.mrb[52].mxu1  ;;  %2418 = vst [vmem:[%s4118_s23 + $0x68] sm:$0xff] %v2402_v56  ;;  %v2401_v62 = vsel %vm2388_vm11, %v2384_v13, 0.0 }
 0x498   : > { %v3139_v28 = vpop.eup %3138  ;;  %1965 = vst [vmem:[%s4186_s15 + $0x50] sm:$0xff] %v3137_v54  ;;  %3158 = vpow2.f32 %v2667_v23  ;;  %v1745_v35 = vadd.f32 %v1744_v32, %v4092_v40  ;;  %v1746_v59 = vpop.f32.mrb[53].mxu1  ;;  %2417 = vst [vmem:[%s4118_s23 + $0x60] sm:$0xff] %v2401_v62 }
 0x499   : > { %v3141_v17 = vpop.eup %3140  ;;  %1966 = vst [vmem:[%s4186_s15 + $0x58] sm:$0xff] %v3139_v28  ;;  %3160 = vpow2.f32 %v2668_v26  ;;  %v1747_v15 = vadd.f32 %v1746_v59, %v4094_v44  ;;  %v1748_v0 = vpop.f32.mrb[54].mxu1 }
 0x49a   : > { %v3143_v4 = vpop.eup %3142  ;;  %v1875_v48 = vadd.f32 1.0, %v3141_v17  ;;  %3162 = vpow2.f32 %v2669_v14  ;;  %v1749_v31 = vadd.f32 %v1748_v0, %v4092_v40  ;;  %v1750_v16 = vpop.f32.mrb[55].mxu1  ;;  %v2670_v47 = vmul.f32 -1.442695, %v1745_v35 }
 0x49b   : > { %v3145_v19 = vpop.eup %3144  ;;  %v1876_v58 = vadd.f32 1.0, %v3143_v4  ;;  %v2320_v1 = vpop.permute.xlu1 %2319  ;;  %v2671_v34 = vmul.f32 -1.442695, %v1747_v15  ;;  %v1751_v2 = vadd.f32 %v1750_v16, %v4094_v44 }
 0x49c   : > { %v3147_v55 = vpop.eup %3146  ;;  %3164 = vrcp.f32 %v1875_v48  ;;  %v1877_v60 = vadd.f32 1.0, %v3145_v19  ;;  %v2318_v5 = vpop.permute.xlu0 %2317  ;;  %v2672_v18 = vmul.f32 -1.442695, %v1749_v31  ;;  %v2387_v10 = vsel %vm2371_vm10, %v2370_v12, %v2320_v1 }
 0x49d   : > { %v3149_v49 = vpop.eup %3148  ;;  %3166 = vrcp.f32 %v1876_v58  ;;  %v1878_v8 = vadd.f32 1.0, %v3147_v55  ;;  %v2386_v42 = vsel %vm2371_vm10, %v2369_v45, %v2318_v5  ;;  %v2673_v30 = vmul.f32 -1.442695, %v1751_v2 }
 0x49e   : > { %v3151_v6 = vpop.eup %3150  ;;  %1967 = vst [vmem:[%s4186_s15 + $0x60] sm:$0xff] %v3149_v49  ;;  %3168 = vrcp.f32 %v1877_v60  ;;  %v2404_v52 = vsel %vm2388_vm11, %v2387_v10, 0.0  ;;  %v2403_v38 = vsel %vm2388_vm11, %v2386_v42, 0.0 }
 0x49f   : > { %v3153_v22 = vpop.eup %3152  ;;  %1968 = vst [vmem:[%s4186_s15 + $0x68] sm:$0xff] %v3151_v6  ;;  %3170 = vrcp.f32 %v1878_v8  ;;  %2420 = vst [vmem:[%s4118_s23 + $0x78] sm:$0xff] %v2404_v52  ;;  %v1754_v20 = vpop.f32.mrb[56].mxu1 }
 0x4a0   : > { %v3155_v21 = vpop.eup %3154  ;;  %1969 = vst [vmem:[%s4186_s15 + $0x70] sm:$0xff] %v3153_v22  ;;  %3172 = vpow2.f32 %v2670_v47  ;;  %2419 = vst [vmem:[%s4118_s23 + $0x70] sm:$0xff] %v2403_v38  ;;  %v1755_v43 = vadd.f32 %v1754_v20, %v4092_v40  ;;  %v1756_v3 = vpop.f32.mrb[57].mxu1 }
 0x4a1   : > { %v3157_v36 = vpop.eup %3156  ;;  %1970 = vst [vmem:[%s4186_s15 + $0x78] sm:$0xff] %v3155_v21  ;;  %3174 = vpow2.f32 %v2671_v34 }
 0x4a2   : > { %3255 = shalt.err (!%p3252_p4)
}
 0x4a3   : > { %s3256_s23 = scalar_lea.hbm %s4266_s20, 2048  ;;  %s3260_s14 = scalar_lea.hbm %s4388_s13, 4096 }
 0x4a4   : > { %p3257_p5 = scmp.ne.s32.totalorder %s4266_s20, %s3256_s23  ;;  %p3261_p1 = scmp.lt.u32.totalorder %s4266_s20, %s4388_s13 }
 0x4a5   : > { %p3262_p3 = scmp.lt.u32.totalorder %s3260_s14, %s3256_s23  ;;  %p3264_p6 = scmp.lt.u32.totalorder %s3256_s23, %s4266_s20 }
 0x4a6   : > { %p3258_p7 = pnand %p3257_p5, %p4408_p12 }
 0x4a7   : > { %p3263_p11 = por %p3262_p3, %p3261_p1 }
 0x4a8   : > { %p3259_p9 = pneg %p3258_p7 }
 0x4a9   : > { %p3265_p13 = por %p3264_p6, %p3263_p11 }
 0x4ab   : > { %p3266_p8 = pnand %p3265_p13, %p3259_p9 }
 0x4ad   : > { %3269 = shalt.err (!%p3266_p8)
}
 0x4ae   : > { %s3353_s28 = smov 128   ;;  %s3354_s27 = smov 8   ;;  %v3159_v39 = vpop.eup %3158  ;;  %v1879_v53 = vadd.f32 1.0, %v3157_v36  ;;  %3176 = vpow2.f32 %v2672_v18  ;;  %v1757_v7 = vadd.f32 %v1756_v3, %v4094_v44  ;;  %v1758_v61 = vpop.f32.mrb[58].mxu1  ;;  %v2674_v57 = vmul.f32 -1.442695, %v1755_v43 }
 0x4af   : > { %s4409_s0 = scalar_lea.sflag [#allocation4], %s3537_s18  ;;  %v3161_v46 = vpop.eup %3160  ;;  %v1880_v63 = vadd.f32 1.0, %v3159_v39  ;;  %3178 = vpow2.f32 %v2673_v30  ;;  %v1759_v23 = vadd.f32 %v1758_v61, %v4092_v40  ;;  %v1760_v9 = vpop.f32.mrb[59].mxu1  ;;  %s4410_s23 = sld [smem:[#allocation16_spill]] }
 0x4b0   : > { %2924 = dma.vmem_to_hbm [thread:$0]  (%p4408_p12), %s4268_s19, 2048, %s4266_s20, %s4409_s0, %s3353_s28, %s3353_s28, %s3354_s27   ;;  %v3163_v33 = vpop.eup %3162  ;;  %3180 = vrcp.f32 %v1879_v53  ;;  %v1881_v37 = vadd.f32 1.0, %v3161_v46  ;;  %v1761_v26 = vadd.f32 %v1760_v9, %v4094_v44  ;;  %v2675_v27 = vmul.f32 -1.442695, %v1757_v7 }
 0x4b1   : > { %3182 = vrcp.f32 %v1880_v63  ;;  %v1882_v25 = vadd.f32 1.0, %v3163_v33  ;;  %v3165_v14 = vpop.eup %3164  ;;  %v2676_v54 = vmul.f32 -1.442695, %v1759_v23  ;;  %s2709_s0 = sshll.u32 %s3454_s17, 12  ;;  %s2457_s19 = sshll.u32 %s4186_s15, 4  ;;  %s4328_s19 = int_to_ptr.vmem [resolvable:$true] %s2457_s19 }
 0x4b2   : > { %3184 = vrcp.f32 %v1881_v37  ;;  %v3167_v28 = vpop.eup %3166  ;;  %1971 = vst [vmem:[%s4186_s15 + $0x80] sm:$0xff] %v3165_v14  ;;  %v2677_v40 = vmul.f32 -1.442695, %v1761_v26  ;;  %s2427_s17 = scalar_lea.sflag [#allocation7], %s3537_s18  ;;  %s3270_s22 = scalar_lea.vmem %s4328_s19, 4096 }
 0x4b3   : > { %3186 = vrcp.f32 %v1882_v25  ;;  %v3169_v51 = vpop.eup %3168  ;;  %1972 = vst [vmem:[%s4186_s15 + $0x88] sm:$0xff] %v3167_v28  ;;  %p3271_p10 = scmp.ne.s32.totalorder %s4328_s19, %s3270_s22  ;;  %s3355_s14 = smov [#allocation6]  }
 0x4b4   : > { %3188 = vpow2.f32 %v2674_v57  ;;  %v3171_v50 = vpop.eup %3170  ;;  %1973 = vst [vmem:[%s4186_s15 + $0x90] sm:$0xff] %v3169_v51  ;;  %s3274_s29 = sshll.u32 %s3355_s14, 4  ;;  %s3275_s29 = int_to_ptr.vmem [resolvable:$false] %s3274_s29 }
 0x4b5   : > { %3190 = vpow2.f32 %v2675_v27  ;;  %v3173_v11 = vpop.eup %3172  ;;  %1974 = vst [vmem:[%s4186_s15 + $0x98] sm:$0xff] %v3171_v50  ;;  %s4326_s21 = scalar_lea.hbm %s4410_s23, %s2709_s0  ;;  %p3272_p0 = pnand %p3271_p10, %p4408_p12 }
 0x4b6   : > { %3192 = vpow2.f32 %v2676_v54  ;;  %v3175_v44 = vpop.eup %3174  ;;  %v1883_v32 = vadd.f32 1.0, %v3173_v11  ;;  %s3276_s28 = scalar_lea.vmem %s3275_s29, 8192  ;;  %p3277_p4 = scmp.lt.s32.totalorder %s4328_s19, %s3275_s29 }
 0x4b7   : > { %3194 = vpow2.f32 %v2677_v40  ;;  %v1884_v17 = vadd.f32 1.0, %v3175_v44  ;;  %p3273_p2 = pneg %p3272_p0  ;;  %p3278_p5 = scmp.lt.s32.totalorder %s3276_s28, %s3270_s22 }
 0x4b8   : > { %v3177_v41 = vpop.eup %3176  ;;  %3196 = vrcp.f32 %v1883_v32 }
 0x4b9   : > { %v3179_v12 = vpop.eup %3178  ;;  %v1885_v35 = vadd.f32 1.0, %v3177_v41  ;;  %3198 = vrcp.f32 %v1884_v17  ;;  %p3279_p7 = por %p3278_p5, %p3277_p4 }
 0x4ba   : > { %v3181_v24 = vpop.eup %3180  ;;  %v1886_v59 = vadd.f32 1.0, %v3179_v12 }
 0x4bb   : > { %v3183_v29 = vpop.eup %3182  ;;  %1975 = vst [vmem:[%s4186_s15 + $0xa0] sm:$0xff] %v3181_v24  ;;  %3200 = vrcp.f32 %v1885_v35  ;;  %p3280_p9 = pnand %p3279_p7, %p3273_p2 }
 0x4bc   : > { %v3185_v4 = vpop.eup %3184  ;;  %1976 = vst [vmem:[%s4186_s15 + $0xa8] sm:$0xff] %v3183_v29  ;;  %3202 = vrcp.f32 %v1886_v59 }
 0x4bd   : > { %v3187_v48 = vpop.eup %3186  ;;  %1977 = vst [vmem:[%s4186_s15 + $0xb0] sm:$0xff] %v3185_v4 }
 0x4be   : > { %v3189_v56 = vpop.eup %3188  ;;  %1978 = vst [vmem:[%s4186_s15 + $0xb8] sm:$0xff] %v3187_v48 }
 0x4bf   : > { %v3191_v15 = vpop.eup %3190  ;;  %v1887_v0 = vadd.f32 1.0, %v3189_v56 }
 0x4c0   : > { %v3193_v19 = vpop.eup %3192  ;;  %v1888_v45 = vadd.f32 1.0, %v3191_v15 }
 0x4c1   : > { %v3195_v58 = vpop.eup %3194  ;;  %3204 = vrcp.f32 %v1887_v0  ;;  %v1889_v13 = vadd.f32 1.0, %v3193_v19 }
 0x4c2   : > { %3206 = vrcp.f32 %v1888_v45  ;;  %v1890_v31 = vadd.f32 1.0, %v3195_v58  ;;  %v3197_v16 = vpop.eup %3196 }
 0x4c3   : > { %3208 = vrcp.f32 %v1889_v13  ;;  %v3199_v55 = vpop.eup %3198  ;;  %1979 = vst [vmem:[%s4186_s15 + $0xc0] sm:$0xff] %v3197_v16 }
 0x4c4   : > { %3210 = vrcp.f32 %v1890_v31  ;;  %1980 = vst [vmem:[%s4186_s15 + $0xc8] sm:$0xff] %v3199_v55 }
 0x4c5   : > { %v3201_v60 = vpop.eup %3200 }
 0x4c6   : > { %v3203_v47 = vpop.eup %3202  ;;  %1981 = vst [vmem:[%s4186_s15 + $0xd0] sm:$0xff] %v3201_v60 }
 0x4c7   : > { %1982 = vst [vmem:[%s4186_s15 + $0xd8] sm:$0xff] %v3203_v47 }
 0x4cb   : > { %v3205_v62 = vpop.eup %3204 }
 0x4cc   : > { %v3207_v1 = vpop.eup %3206  ;;  %1983 = vst [vmem:[%s4186_s15 + $0xe0] sm:$0xff] %v3205_v62 }
 0x4cd   : > { %v3209_v49 = vpop.eup %3208  ;;  %1984 = vst [vmem:[%s4186_s15 + $0xe8] sm:$0xff] %v3207_v1 }
 0x4ce   : > { %v3211_v8 = vpop.eup %3210  ;;  %1985 = vst [vmem:[%s4186_s15 + $0xf0] sm:$0xff] %v3209_v49 }
 0x4cf   : > { %1986 = vst [vmem:[%s4186_s15 + $0xf8] sm:$0xff] %v3211_v8 }
 0x4d0   : > { %3283 = shalt.err (!%p3280_p9)
}
 0x4d1   : > { %s3284_s15 = scalar_lea.hbm %s4326_s21, 4096  ;;  %s3288_s20 = scalar_lea.hbm %s4410_s23, 8192 }
 0x4d2   : > { %p3285_p1 = scmp.ne.s32.totalorder %s4326_s21, %s3284_s15  ;;  %p3289_p6 = scmp.lt.u32.totalorder %s4326_s21, %s4410_s23 }
 0x4d3   : > { %p3290_p13 = scmp.lt.u32.totalorder %s3288_s20, %s3284_s15  ;;  %p3292_p10 = scmp.lt.u32.totalorder %s3284_s15, %s4326_s21 }
 0x4d4   : > { %p3286_p3 = pnand %p3285_p1, %p4408_p12 }
 0x4d5   : > { %p3291_p8 = por %p3290_p13, %p3289_p6 }
 0x4d6   : > { %p3287_p11 = pneg %p3286_p3 }
 0x4d7   : > { %p3293_p0 = por %p3292_p10, %p3291_p8 }
 0x4d9   : > { %p3294_p2 = pnand %p3293_p0, %p3287_p11 }
 0x4db   : > { %3297 = shalt.err (!%p3294_p2)
}
 0x4dc   : > { %s3356_s22 = smov 256   ;;  %s3357_s29 = smov 16  }
 0x4dd   : > { %2925 = dma.vmem_to_hbm [thread:$0]  (%p4408_p12), %s4328_s19, 4096, %s4326_s21, %s2427_s17, %s3356_s22, %s3356_s22, %s3357_s29  }
 0x4de PF: > { %s4411_s28 = sld [smem:[#allocation11_spill]]  ;;  %p4412_p4 = scmp.ne.s32.totalorder %s4405_s26, 0 }
 0x4df   : > { %p4413_p5 = scmp.ge.s32.totalorder %s3340_s16, 2 }
 0x4e1   : > { %p2933_p7 = pnand %p4413_p5, %p4412_p4 }
 0x4e4   : > { %s2472_s27 = sand.u32 1, %s4411_s28  }
 0x4e5   : > { %s2473_s15 = scalar_lea.sflag [#allocation4], %s2472_s27 }
 0x4e6   : > { %3319 = dma.done.wait (!%p2933_p7), %s2473_s15, 2048  }
 0x4e7   : > { %3321 = vsyncadd (!%p2933_p7), %s2473_s15, 4294965248  ;;  %s2482_s0 = scalar_lea.sflag [#allocation7], %s2472_s27 }
 0x4e8   : > { %3323 = dma.done.wait (!%p2933_p7), %s2482_s0, 4096  }
 0x4e9   : > { %3325 = vsyncadd (!%p2933_p7), %s2482_s0, 4294963200  ;;  %s4414_s16 = sld [smem:[#allocation13_spill]]  ;;  %s4415_s20 = sld [smem:[#allocation12_spill]] }
 0x4ea   : > { %s4416_s15 = sld [smem:[#allocation14_spill]]  ;;  %s4417_s29 = smov %s3332_s30 }
 0x4ef   : > { %p31_p12 = scmp.ge.s32.totalorder %s4414_s16, 4   ;;  %s4418_s30 = smov %s4415_s20 }
 0x4f1   :  { %33 = sbr.rel (!%p31_p12) target bundleno = 10 (0xa), region = 137 }
 0x4f8   :  { %2487 = vsyncpa [#allocation3], 1 }
 0x4f9   :  { %2489 = vsyncpa [#allocation3 + $0x1], 1 }
 0x4fa   :  { %2490 = vsyncpa [#allocation4], 1 }
 0x4fb   :  { %2492 = vsyncpa [#allocation4 + $0x1], 1 }
 0x4fc   :  { %2493 = vsyncpa [#allocation7], 1 }
 0x4fd   :  { %2495 = vsyncpa [#allocation7 + $0x1], 1 }

</bundles_post_ra>
